<compile_context>
chip_gen: v6e
topology: v6e:2x2x1
jax: 0.10.0
libtpu: 0.0.40
codegen_flags: <defaults>
</compile_context>

<pallas_src>
import jax
import jax.numpy as jnp
from jax import lax
from jax.experimental import pallas as pl
from jax.experimental.pallas import tpu as pltpu

KS = 25     # spatial-attention kernel size
PAD = 12    # spatial-attention padding (same-size output since 2*PAD == KS-1)
SLAB = 8    # sublane slab width for the channel-reduction loop


def cbam_kernel(x_ref, w1_ref, w2_ref, t_ref, o_ref):
    # x_ref : (Nb, C, HW)  lane-dense input block (HW is a multiple of 128)
    # w1_ref: (C, Cr)      transposed 1x1-conv weight (squeeze -> ReLU)
    # w2_ref: (Cr, C)      transposed 1x1-conv weight (excite -> sigmoid)
    # t_ref : (2*HW, HW)   Toeplitz matrix of the 25x25 "same" spatial conv
    # o_ref : (Nb, C, HW)
    Nb, C, HW = x_ref.shape
    inv_hw = jnp.float32(1.0 / HW)
    inv_c = jnp.float32(1.0 / C)

    # ---- channel attention: GAP -> 1x1 conv -> ReLU -> 1x1 conv -> sigmoid
    # GAP as an MXU matvec (x @ ones) instead of a cross-lane XLU reduction;
    # the loaded x dies right after this dot (it is re-read from VMEM later).
    x2d = x_ref[...].reshape(Nb * C, HW).astype(jnp.float32)
    ones_col = jnp.ones((HW, 1), jnp.float32)
    gap = (jnp.dot(x2d, ones_col, preferred_element_type=jnp.float32)
           * inv_hw).reshape(Nb, C)                               # (Nb, C)
    hidden = jnp.maximum(
        jnp.dot(gap, w1_ref[...], preferred_element_type=jnp.float32), 0.0)
    ca = jax.nn.sigmoid(
        jnp.dot(hidden, w2_ref[...], preferred_element_type=jnp.float32))  # (Nb, C)

    # ---- channel-wise mean / max of (x * ca) WITHOUT materializing x_ca.
    # Short fully-static slab loop over 8-sublane groups (trace-time equivalent
    # of lax.fori_loop(..., unroll=True)); only one (Nb, 8, HW) slab is live.
    xc_sum = jnp.zeros((Nb, HW), jnp.float32)
    xc_max = jnp.full((Nb, HW), -jnp.inf, jnp.float32)
    for i in range(C // SLAB):
        xs = x_ref[:, i * SLAB:(i + 1) * SLAB, :].astype(jnp.float32)  # (Nb, 8, HW)
        cs = ca[:, i * SLAB:(i + 1) * SLAB]                            # (Nb, 8)
        xc = xs * cs[:, :, None]
        xc_sum = xc_sum + jnp.sum(xc, axis=1)
        xc_max = jnp.maximum(xc_max, jnp.max(xc, axis=1))
    avg_out = xc_sum * inv_c                                           # (Nb, HW)

    # ---- spatial attention: [chan-mean ; chan-max] -> 25x25 conv -> sigmoid
    feat = jnp.concatenate([avg_out, xc_max], axis=-1)                 # (Nb, 2*HW)
    conv = jnp.dot(feat, t_ref[...],
                   preferred_element_type=jnp.float32)                 # one MXU matmul
    sa = jax.nn.sigmoid(conv)                                          # (Nb, HW)

    # ---- fused output pass: re-read x once, apply both gates, store lane-dense
    o_ref[...] = (x_ref[...].astype(jnp.float32)
                  * ca[:, :, None] * sa[:, None, :]).astype(o_ref.dtype)


def _build_spatial_toeplitz(w_sa, H, W):
    """Dense Toeplitz matrix of the 2-in/1-out KSxKS 'same' cross-correlation.

    T[c*H*W + ih*W + iw, oh*W + ow] = w_sa[c, ih-oh+PAD, iw-ow+PAD]
    (zero where the kernel tap falls outside [0, KS)).  The zero-padding is
    folded into T, so no padded scratch buffer is needed in the kernel.
    """
    # TODO(synk): this materializes a (2, H, W, H, W) intermediate on the host;
    # for large spatial sizes build T in row-banded (W, W) pieces instead.
    cin = w_sa.shape[0]
    ih = jnp.arange(H)[:, None, None, None]
    iw = jnp.arange(W)[None, :, None, None]
    oh = jnp.arange(H)[None, None, :, None]
    ow = jnp.arange(W)[None, None, None, :]
    kh = ih - oh + PAD
    kw = iw - ow + PAD
    valid = (kh >= 0) & (kh < KS) & (kw >= 0) & (kw < KS)
    kh = jnp.clip(kh, 0, KS - 1)
    kw = jnp.clip(kw, 0, KS - 1)
    taps = w_sa[:, kh, kw]                                    # (cin, H, W, H, W)
    taps = jnp.where(valid[None], taps, 0.0)
    return taps.reshape(cin * H * W, H * W).astype(jnp.float32)


def _two_tensorcores():
    """True on chips with 2 TensorCores (v7x / v4-class); False on v5e/v6e."""
    try:
        kind = jax.devices()[0].device_kind.lower()
    except Exception:
        return False
    return ("v7" in kind) or ("v4" in kind) or ("v5p" in kind)


def cbam_forward(x, w1, w2, w_sa, *, block_n=None):
    N, C, H, W = x.shape
    Cr = w1.shape[0]
    HW = H * W
    assert C % SLAB == 0, "C must be a multiple of 8 (sublane slab width)"
    assert HW % 128 == 0, "H*W must be a multiple of 128 for lane-dense layout"

    if block_n is None:
        if _two_tensorcores() and N >= 2 and N % 2 == 0:
            block_n = N // 2       # v7x: 2 'parallel' steps -> one block per TC
        else:
            block_n = N            # v5e/v6e (1 TC): single grid step, no per-step overhead
    assert N % block_n == 0, "batch must be divisible by block_n"

    # Lane-dense layout: last dim H*W.
    # (For HBM-bound use, x/out can be carried as bf16 on the wire to halve
    #  bytes; kept f32 here to match the PyTorch module's dtype.)
    x_flat = x.reshape(N, C, HW)
    w1_t = jnp.transpose(w1).astype(jnp.float32)              # (C, Cr)
    w2_t = jnp.transpose(w2).astype(jnp.float32)              # (Cr, C)

    t_bytes = 2 * HW * HW * 4
    # TODO(synk): for large H*W (dense Toeplitz approaching v7x's 64 MiB VMEM)
    # switch to a banded per-row (W, W) formulation or tile T's K dimension
    # with an extra 'arbitrary' grid axis + accumulator scratch.
    assert t_bytes <= 24 * 1024 * 1024, "dense Toeplitz too large; use banded conv path"
    t_sa = _build_spatial_toeplitz(w_sa.astype(jnp.float32), H, W)

    # Generation/problem-aware VMEM budget instead of a hard-coded 32 MiB:
    # in/out blocks double-buffered, invariants single-buffered, + f32 temps.
    xblk_bytes = block_n * C * HW * x.dtype.itemsize
    vmem_need = (4 * xblk_bytes + t_bytes
                 + 2 * block_n * C * HW * 4 + (4 << 20))
    vmem_limit_bytes = int(min(max(vmem_need, 32 << 20), 100 << 20))

    def _run(invariant_kwargs):
        in_specs = [
            pl.BlockSpec((block_n, C, HW), lambda n: (n, 0, 0)),
            pl.BlockSpec((C, Cr), lambda n: (0, 0), **invariant_kwargs),
            pl.BlockSpec((Cr, C), lambda n: (0, 0), **invariant_kwargs),
            pl.BlockSpec((2 * HW, HW), lambda n: (0, 0), **invariant_kwargs),
        ]
        out = pl.pallas_call(
            cbam_kernel,
            out_shape=jax.ShapeDtypeStruct((N, C, HW), x.dtype),
            grid=(N // block_n,),
            in_specs=in_specs,
            out_specs=pl.BlockSpec((block_n, C, HW), lambda n: (n, 0, 0)),
            compiler_params=pltpu.CompilerParams(
                dimension_semantics=("parallel",),
                vmem_limit_bytes=vmem_limit_bytes,
            ),
        )(x_flat, w1_t, w2_t, t_sa)
        return jax.block_until_ready(out)

    try:
        # Grid-invariant operands (weights + Toeplitz) get a single buffer:
        # their index_map is constant, so double-buffering only wastes VMEM
        # (2x the Toeplitz footprint) and prefetch bookkeeping.
        out_flat = _run(dict(pipeline_mode=pl.Buffered(1)))
    except Exception:
        # Fallback for jax versions where pipeline_mode is not plumbed through
        # the pallas_call pipeline; functionally identical (just double-buffers).
        out_flat = _run({})
    return out_flat.reshape(N, C, H, W)


def cbam_ref(x, w1, w2, w_sa):
    """Pure-JAX reference matching the PyTorch forward (HIGHEST precision)."""
    gap = jnp.mean(x, axis=(2, 3))                            # (N, C)
    hidden = jnp.maximum(
        jnp.dot(gap, w1.T, precision=lax.Precision.HIGHEST), 0.0)
    ca = jax.nn.sigmoid(jnp.dot(hidden, w2.T, precision=lax.Precision.HIGHEST))
    x1 = x * ca[:, :, None, None]
    avg = jnp.mean(x1, axis=1, keepdims=True)
    mx = jnp.max(x1, axis=1, keepdims=True)
    feat = jnp.concatenate([avg, mx], axis=1)                 # (N, 2, H, W)
    conv = lax.conv_general_dilated(
        feat, w_sa[None],                                     # (1, 2, KS, KS)
        window_strides=(1, 1),
        padding=((PAD, PAD), (PAD, PAD)),
        dimension_numbers=("NCHW", "OIHW", "NCHW"),
        precision=lax.Precision.HIGHEST)
    sa = jax.nn.sigmoid(conv)
    return x1 * sa


if __name__ == "__main__":
    key = jax.random.PRNGKey(0)
    kx, k1, k2, k3 = jax.random.split(key, 4)

    N, C, H, W = 2, 32, 16, 16
    reduction = 16
    Cr = C // reduction                                       # = 2

    x = jax.random.normal(kx, (N, C, H, W), jnp.float32)
    w1 = jax.random.normal(k1, (Cr, C), jnp.float32) * 0.2
    w2 = jax.random.normal(k2, (C, Cr), jnp.float32) * 0.2
    w_sa = jax.random.normal(k3, (2, KS, KS), jnp.float32) * 0.05

    out = jax.block_until_ready(cbam_forward(x, w1, w2, w_sa))
    ref = jax.block_until_ready(cbam_ref(x, w1, w2, w_sa))

    assert out.shape == (N, C, H, W)
    err = float(jnp.max(jnp.abs(out - ref)))
    # Kernel matmuls now run at DEFAULT precision (single bf16 pass, f32
    # accumulation) per the perf review; typical error vs the HIGHEST-precision
    # reference is ~1e-3, so use a bf16-appropriate tolerance.
    assert err < 2e-2, f"max abs err {err}"
    print("KERNEL_OK")
</pallas_src>

<mosaic_0001>
module attributes {stable_mosaic.version = 11 : i64} {
  func.func @cbam_kernel(%arg0: i32, %arg1: memref<2x32x256xf32, #tpu.memory_space<vmem>>, %arg2: memref<32x2xf32, #tpu.memory_space<vmem>>, %arg3: memref<2x32xf32, #tpu.memory_space<vmem>>, %arg4: memref<512x256xf32, #tpu.memory_space<vmem>>, %arg5: memref<2x32x256xf32, #tpu.memory_space<vmem>>) attributes {dimension_semantics = [#tpu.dimension_semantics<parallel>], iteration_bounds = array<i64: 1>, scalar_prefetch = 0 : i64, scratch_operands = 0 : i64, tpu.core_type = #tpu.core_type<tc>, window_params = [{transform_indices = @transform_0, window_bounds = array<i64: 2, 32, 256>}, {pipeline_mode = #tpu.pipeline_mode<synchronous>, transform_indices = @transform_1, window_bounds = array<i64: 32, 2>}, {pipeline_mode = #tpu.pipeline_mode<synchronous>, transform_indices = @transform_2, window_bounds = array<i64: 2, 32>}, {pipeline_mode = #tpu.pipeline_mode<synchronous>, transform_indices = @transform_3, window_bounds = array<i64: 512, 256>}, {transform_indices = @transform_4, window_bounds = array<i64: 2, 32, 256>}]} {
    %c0 = arith.constant 0 : index
    %c0_0 = arith.constant 0 : index
    %c0_1 = arith.constant 0 : index
    %0 = vector.load %arg1[%c0, %c0_0, %c0_1] : memref<2x32x256xf32, #tpu.memory_space<vmem>>, vector<2x32x256xf32>
    %1 = vector.shape_cast %0 : vector<2x32x256xf32> to vector<64x256xf32>
    %cst = arith.constant 1.000000e+00 : f32
    %2 = vector.broadcast %cst : f32 to vector<256x1xf32>
    %cst_2 = arith.constant dense<0.000000e+00> : vector<64x1xf32>
    %3 = tpu.matmul %1, %2, %cst_2 {dimension_numbers = #tpu.dot_dimension_numbers<[1], [0], [0], [1], [0, 0, 1, 1], [], []>} : vector<64x256xf32>, vector<256x1xf32>, vector<64x1xf32> -> vector<64x1xf32>
    %cst_3 = arith.constant 3.906250e-03 : f32
    %4 = vector.broadcast %cst_3 : f32 to vector<64x1xf32>
    %5 = arith.mulf %3, %4 : vector<64x1xf32>
    %6 = vector.shape_cast %5 : vector<64x1xf32> to vector<2x32xf32>
    %c0_4 = arith.constant 0 : index
    %c0_5 = arith.constant 0 : index
    %7 = vector.load %arg2[%c0_4, %c0_5] : memref<32x2xf32, #tpu.memory_space<vmem>>, vector<32x2xf32>
    %cst_6 = arith.constant dense<0.000000e+00> : vector<2x2xf32>
    %8 = tpu.matmul %6, %7, %cst_6 {dimension_numbers = #tpu.dot_dimension_numbers<[1], [0], [0], [1], [0, 0, 1, 1], [], []>} : vector<2x32xf32>, vector<32x2xf32>, vector<2x2xf32> -> vector<2x2xf32>
    %cst_7 = arith.constant 0.000000e+00 : f32
    %9 = vector.broadcast %cst_7 : f32 to vector<2x2xf32>
    %10 = arith.maximumf %8, %9 : vector<2x2xf32>
    %c0_8 = arith.constant 0 : index
    %c0_9 = arith.constant 0 : index
    %11 = vector.load %arg3[%c0_8, %c0_9] : memref<2x32xf32, #tpu.memory_space<vmem>>, vector<2x32xf32>
    %cst_10 = arith.constant dense<0.000000e+00> : vector<2x32xf32>
    %12 = tpu.matmul %10, %11, %cst_10 {dimension_numbers = #tpu.dot_dimension_numbers<[1], [0], [0], [1], [0, 0, 1, 1], [], []>} : vector<2x2xf32>, vector<2x32xf32>, vector<2x32xf32> -> vector<2x32xf32>
    %13 = arith.negf %12 : vector<2x32xf32>
    %14 = math.exp %13 : vector<2x32xf32>
    %cst_11 = arith.constant 1.000000e+00 : f32
    %15 = vector.broadcast %cst_11 : f32 to vector<2x32xf32>
    %16 = arith.addf %15, %14 : vector<2x32xf32>
    %17 = arith.divf %15, %16 : vector<2x32xf32>
    %cst_12 = arith.constant 0.000000e+00 : f32
    %18 = vector.broadcast %cst_12 : f32 to vector<2x256xf32>
    %cst_13 = arith.constant 0xFF800000 : f32
    %19 = vector.broadcast %cst_13 : f32 to vector<2x256xf32>
    %c0_14 = arith.constant 0 : index
    %c0_15 = arith.constant 0 : index
    %c0_16 = arith.constant 0 : index
    %20 = vector.load %arg1[%c0_14, %c0_15, %c0_16] : memref<2x32x256xf32, #tpu.memory_space<vmem>>, vector<2x8x256xf32>
    %21 = vector.extract_strided_slice %17 {offsets = [0, 0], sizes = [2, 8], strides = [1, 1]} : vector<2x32xf32> to vector<2x8xf32>
    %22 = vector.shape_cast %21 : vector<2x8xf32> to vector<2x8x1xf32>
    %23 = vector.broadcast %22 : vector<2x8x1xf32> to vector<2x8x256xf32>
    %24 = arith.mulf %20, %23 : vector<2x8x256xf32>
    %cst_17 = arith.constant dense<0.000000e+00> : vector<2x256xf32>
    %25 = vector.multi_reduction <add>, %24, %cst_17 [1] : vector<2x8x256xf32> to vector<2x256xf32>
    %26 = arith.addf %18, %25 : vector<2x256xf32>
    %cst_18 = arith.constant dense<0xFF800000> : vector<2x256xf32>
    %27 = vector.multi_reduction <maximumf>, %24, %cst_18 [1] : vector<2x8x256xf32> to vector<2x256xf32>
    %28 = arith.maximumf %19, %27 : vector<2x256xf32>
    %c0_19 = arith.constant 0 : index
    %c8 = arith.constant 8 : index
    %c0_20 = arith.constant 0 : index
    %29 = vector.load %arg1[%c0_19, %c8, %c0_20] : memref<2x32x256xf32, #tpu.memory_space<vmem>>, vector<2x8x256xf32>
    %30 = vector.extract_strided_slice %17 {offsets = [0, 8], sizes = [2, 8], strides = [1, 1]} : vector<2x32xf32> to vector<2x8xf32>
    %31 = vector.shape_cast %30 : vector<2x8xf32> to vector<2x8x1xf32>
    %32 = vector.broadcast %31 : vector<2x8x1xf32> to vector<2x8x256xf32>
    %33 = arith.mulf %29, %32 : vector<2x8x256xf32>
    %cst_21 = arith.constant dense<0.000000e+00> : vector<2x256xf32>
    %34 = vector.multi_reduction <add>, %33, %cst_21 [1] : vector<2x8x256xf32> to vector<2x256xf32>
    %35 = arith.addf %26, %34 : vector<2x256xf32>
    %cst_22 = arith.constant dense<0xFF800000> : vector<2x256xf32>
    %36 = vector.multi_reduction <maximumf>, %33, %cst_22 [1] : vector<2x8x256xf32> to vector<2x256xf32>
    %37 = arith.maximumf %28, %36 : vector<2x256xf32>
    %c0_23 = arith.constant 0 : index
    %c16 = arith.constant 16 : index
    %c0_24 = arith.constant 0 : index
    %38 = vector.load %arg1[%c0_23, %c16, %c0_24] : memref<2x32x256xf32, #tpu.memory_space<vmem>>, vector<2x8x256xf32>
    %39 = vector.extract_strided_slice %17 {offsets = [0, 16], sizes = [2, 8], strides = [1, 1]} : vector<2x32xf32> to vector<2x8xf32>
    %40 = vector.shape_cast %39 : vector<2x8xf32> to vector<2x8x1xf32>
    %41 = vector.broadcast %40 : vector<2x8x1xf32> to vector<2x8x256xf32>
    %42 = arith.mulf %38, %41 : vector<2x8x256xf32>
    %cst_25 = arith.constant dense<0.000000e+00> : vector<2x256xf32>
    %43 = vector.multi_reduction <add>, %42, %cst_25 [1] : vector<2x8x256xf32> to vector<2x256xf32>
    %44 = arith.addf %35, %43 : vector<2x256xf32>
    %cst_26 = arith.constant dense<0xFF800000> : vector<2x256xf32>
    %45 = vector.multi_reduction <maximumf>, %42, %cst_26 [1] : vector<2x8x256xf32> to vector<2x256xf32>
    %46 = arith.maximumf %37, %45 : vector<2x256xf32>
    %c0_27 = arith.constant 0 : index
    %c24 = arith.constant 24 : index
    %c0_28 = arith.constant 0 : index
    %47 = vector.load %arg1[%c0_27, %c24, %c0_28] : memref<2x32x256xf32, #tpu.memory_space<vmem>>, vector<2x8x256xf32>
    %48 = vector.extract_strided_slice %17 {offsets = [0, 24], sizes = [2, 8], strides = [1, 1]} : vector<2x32xf32> to vector<2x8xf32>
    %49 = vector.shape_cast %48 : vector<2x8xf32> to vector<2x8x1xf32>
    %50 = vector.broadcast %49 : vector<2x8x1xf32> to vector<2x8x256xf32>
    %51 = arith.mulf %47, %50 : vector<2x8x256xf32>
    %cst_29 = arith.constant dense<0.000000e+00> : vector<2x256xf32>
    %52 = vector.multi_reduction <add>, %51, %cst_29 [1] : vector<2x8x256xf32> to vector<2x256xf32>
    %53 = arith.addf %44, %52 : vector<2x256xf32>
    %cst_30 = arith.constant dense<0xFF800000> : vector<2x256xf32>
    %54 = vector.multi_reduction <maximumf>, %51, %cst_30 [1] : vector<2x8x256xf32> to vector<2x256xf32>
    %55 = arith.maximumf %46, %54 : vector<2x256xf32>
    %cst_31 = arith.constant 3.125000e-02 : f32
    %56 = vector.broadcast %cst_31 : f32 to vector<2x256xf32>
    %57 = arith.mulf %53, %56 : vector<2x256xf32>
    %58 = tpu.concatenate %57, %55 in 1 : vector<2x256xf32>, vector<2x256xf32> -> vector<2x512xf32>
    %c0_32 = arith.constant 0 : index
    %c0_33 = arith.constant 0 : index
    %59 = vector.load %arg4[%c0_32, %c0_33] : memref<512x256xf32, #tpu.memory_space<vmem>>, vector<512x256xf32>
    %cst_34 = arith.constant dense<0.000000e+00> : vector<2x256xf32>
    %60 = tpu.matmul %58, %59, %cst_34 {dimension_numbers = #tpu.dot_dimension_numbers<[1], [0], [0], [1], [0, 0, 1, 1], [], []>} : vector<2x512xf32>, vector<512x256xf32>, vector<2x256xf32> -> vector<2x256xf32>
    %61 = arith.negf %60 : vector<2x256xf32>
    %62 = math.exp %61 : vector<2x256xf32>
    %cst_35 = arith.constant 1.000000e+00 : f32
    %63 = vector.broadcast %cst_35 : f32 to vector<2x256xf32>
    %64 = arith.addf %63, %62 : vector<2x256xf32>
    %65 = arith.divf %63, %64 : vector<2x256xf32>
    %c0_36 = arith.constant 0 : index
    %c0_37 = arith.constant 0 : index
    %c0_38 = arith.constant 0 : index
    %66 = vector.load %arg1[%c0_36, %c0_37, %c0_38] : memref<2x32x256xf32, #tpu.memory_space<vmem>>, vector<2x32x256xf32>
    %67 = vector.shape_cast %17 : vector<2x32xf32> to vector<2x32x1xf32>
    %68 = vector.broadcast %67 : vector<2x32x1xf32> to vector<2x32x256xf32>
    %69 = arith.mulf %66, %68 : vector<2x32x256xf32>
    %70 = vector.shape_cast %65 : vector<2x256xf32> to vector<2x1x256xf32>
    %71 = vector.broadcast %70 : vector<2x1x256xf32> to vector<2x32x256xf32>
    %72 = arith.mulf %69, %71 : vector<2x32x256xf32>
    %c0_39 = arith.constant 0 : index
    %c0_40 = arith.constant 0 : index
    %c0_41 = arith.constant 0 : index
    %73 = vector.load %arg5[%c0_39, %c0_40, %c0_41] : memref<2x32x256xf32, #tpu.memory_space<vmem>>, vector<2x32x256xf32>
    tpu.vector_store %arg5[%c0_39, %c0_40, %c0_41], %72 {strides = array<i32>} : memref<2x32x256xf32, #tpu.memory_space<vmem>>, vector<2x32x256xf32>,
    return
  }
  func.func @transform_0(%arg0: i32) -> (i32, i32, i32) {
    %c0_i32 = arith.constant 0 : i32
    %c0_i32_0 = arith.constant 0 : i32
    %c0_i32_1 = arith.constant 0 : i32
    return %arg0, %c0_i32, %c0_i32_0 : i32, i32, i32
  }
  func.func @transform_1(%arg0: i32) -> (i32, i32) {
    %c0_i32 = arith.constant 0 : i32
    %c0_i32_0 = arith.constant 0 : i32
    %c0_i32_1 = arith.constant 0 : i32
    return %c0_i32, %c0_i32_0 : i32, i32
  }
  func.func @transform_2(%arg0: i32) -> (i32, i32) {
    %c0_i32 = arith.constant 0 : i32
    %c0_i32_0 = arith.constant 0 : i32
    %c0_i32_1 = arith.constant 0 : i32
    return %c0_i32, %c0_i32_0 : i32, i32
  }
  func.func @transform_3(%arg0: i32) -> (i32, i32) {
    %c0_i32 = arith.constant 0 : i32
    %c0_i32_0 = arith.constant 0 : i32
    %c0_i32_1 = arith.constant 0 : i32
    return %c0_i32, %c0_i32_0 : i32, i32
  }
  func.func @transform_4(%arg0: i32) -> (i32, i32, i32) {
    %c0_i32 = arith.constant 0 : i32
    %c0_i32_0 = arith.constant 0 : i32
    %c0_i32_1 = arith.constant 0 : i32
    return %arg0, %c0_i32, %c0_i32_0 : i32, i32, i32
  }
}

module attributes {stable_mosaic.version = 11 : i64} {
  func.func @cbam_kernel(%arg0: i32, %arg1: memref<2x32x256xf32, #tpu.memory_space<vmem>>, %arg2: memref<32x2xf32, #tpu.memory_space<vmem>>, %arg3: memref<2x32xf32, #tpu.memory_space<vmem>>, %arg4: memref<512x256xf32, #tpu.memory_space<vmem>>, %arg5: memref<2x32x256xf32, #tpu.memory_space<vmem>>) attributes {dimension_semantics = [#tpu.dimension_semantics<parallel>], iteration_bounds = array<i64: 1>, scalar_prefetch = 0 : i64, scratch_operands = 0 : i64, tpu.core_type = #tpu.core_type<tc>, window_params = [{transform_indices = @transform_0, window_bounds = array<i64: 2, 32, 256>}, {pipeline_mode = #tpu.pipeline_mode<synchronous>, transform_indices = @transform_1, window_bounds = array<i64: 32, 2>}, {pipeline_mode = #tpu.pipeline_mode<synchronous>, transform_indices = @transform_2, window_bounds = array<i64: 2, 32>}, {pipeline_mode = #tpu.pipeline_mode<synchronous>, transform_indices = @transform_3, window_bounds = array<i64: 512, 256>}, {transform_indices = @transform_4, window_bounds = array<i64: 2, 32, 256>}]} {
    %c0 = arith.constant 0 : index
    %c0_0 = arith.constant 0 : index
    %c0_1 = arith.constant 0 : index
    %0 = vector.load %arg1[%c0, %c0_0, %c0_1] : memref<2x32x256xf32, #tpu.memory_space<vmem>>, vector<2x32x256xf32>
    %1 = vector.shape_cast %0 : vector<2x32x256xf32> to vector<64x256xf32>
    %cst = arith.constant 1.000000e+00 : f32
    %2 = vector.broadcast %cst : f32 to vector<256x1xf32>
    %cst_2 = arith.constant dense<0.000000e+00> : vector<64x1xf32>
    %3 = tpu.matmul %1, %2, %cst_2 {dimension_numbers = #tpu.dot_dimension_numbers<[1], [0], [0], [1], [0, 0, 1, 1], [], []>} : vector<64x256xf32>, vector<256x1xf32>, vector<64x1xf32> -> vector<64x1xf32>
    %cst_3 = arith.constant 3.906250e-03 : f32
    %4 = vector.broadcast %cst_3 : f32 to vector<64x1xf32>
    %5 = arith.mulf %3, %4 : vector<64x1xf32>
    %6 = vector.shape_cast %5 : vector<64x1xf32> to vector<2x32xf32>
    %c0_4 = arith.constant 0 : index
    %c0_5 = arith.constant 0 : index
    %7 = vector.load %arg2[%c0_4, %c0_5] : memref<32x2xf32, #tpu.memory_space<vmem>>, vector<32x2xf32>
    %cst_6 = arith.constant dense<0.000000e+00> : vector<2x2xf32>
    %8 = tpu.matmul %6, %7, %cst_6 {dimension_numbers = #tpu.dot_dimension_numbers<[1], [0], [0], [1], [0, 0, 1, 1], [], []>} : vector<2x32xf32>, vector<32x2xf32>, vector<2x2xf32> -> vector<2x2xf32>
    %cst_7 = arith.constant 0.000000e+00 : f32
    %9 = vector.broadcast %cst_7 : f32 to vector<2x2xf32>
    %10 = arith.maximumf %8, %9 : vector<2x2xf32>
    %c0_8 = arith.constant 0 : index
    %c0_9 = arith.constant 0 : index
    %11 = vector.load %arg3[%c0_8, %c0_9] : memref<2x32xf32, #tpu.memory_space<vmem>>, vector<2x32xf32>
    %cst_10 = arith.constant dense<0.000000e+00> : vector<2x32xf32>
    %12 = tpu.matmul %10, %11, %cst_10 {dimension_numbers = #tpu.dot_dimension_numbers<[1], [0], [0], [1], [0, 0, 1, 1], [], []>} : vector<2x2xf32>, vector<2x32xf32>, vector<2x32xf32> -> vector<2x32xf32>
    %13 = arith.negf %12 : vector<2x32xf32>
    %14 = math.exp %13 : vector<2x32xf32>
    %cst_11 = arith.constant 1.000000e+00 : f32
    %15 = vector.broadcast %cst_11 : f32 to vector<2x32xf32>
    %16 = arith.addf %15, %14 : vector<2x32xf32>
    %17 = arith.divf %15, %16 : vector<2x32xf32>
    %cst_12 = arith.constant 0.000000e+00 : f32
    %18 = vector.broadcast %cst_12 : f32 to vector<2x256xf32>
    %cst_13 = arith.constant 0xFF800000 : f32
    %19 = vector.broadcast %cst_13 : f32 to vector<2x256xf32>
    %c0_14 = arith.constant 0 : index
    %c0_15 = arith.constant 0 : index
    %c0_16 = arith.constant 0 : index
    %20 = vector.load %arg1[%c0_14, %c0_15, %c0_16] : memref<2x32x256xf32, #tpu.memory_space<vmem>>, vector<2x8x256xf32>
    %21 = vector.extract_strided_slice %17 {offsets = [0, 0], sizes = [2, 8], strides = [1, 1]} : vector<2x32xf32> to vector<2x8xf32>
    %22 = vector.shape_cast %21 : vector<2x8xf32> to vector<2x8x1xf32>
    %23 = vector.broadcast %22 : vector<2x8x1xf32> to vector<2x8x256xf32>
    %24 = arith.mulf %20, %23 : vector<2x8x256xf32>
    %cst_17 = arith.constant dense<0.000000e+00> : vector<2x256xf32>
    %25 = vector.multi_reduction <add>, %24, %cst_17 [1] : vector<2x8x256xf32> to vector<2x256xf32>
    %26 = arith.addf %18, %25 : vector<2x256xf32>
    %cst_18 = arith.constant dense<0xFF800000> : vector<2x256xf32>
    %27 = vector.multi_reduction <maximumf>, %24, %cst_18 [1] : vector<2x8x256xf32> to vector<2x256xf32>
    %28 = arith.maximumf %19, %27 : vector<2x256xf32>
    %c0_19 = arith.constant 0 : index
    %c8 = arith.constant 8 : index
    %c0_20 = arith.constant 0 : index
    %29 = vector.load %arg1[%c0_19, %c8, %c0_20] : memref<2x32x256xf32, #tpu.memory_space<vmem>>, vector<2x8x256xf32>
    %30 = vector.extract_strided_slice %17 {offsets = [0, 8], sizes = [2, 8], strides = [1, 1]} : vector<2x32xf32> to vector<2x8xf32>
    %31 = vector.shape_cast %30 : vector<2x8xf32> to vector<2x8x1xf32>
    %32 = vector.broadcast %31 : vector<2x8x1xf32> to vector<2x8x256xf32>
    %33 = arith.mulf %29, %32 : vector<2x8x256xf32>
    %cst_21 = arith.constant dense<0.000000e+00> : vector<2x256xf32>
    %34 = vector.multi_reduction <add>, %33, %cst_21 [1] : vector<2x8x256xf32> to vector<2x256xf32>
    %35 = arith.addf %26, %34 : vector<2x256xf32>
    %cst_22 = arith.constant dense<0xFF800000> : vector<2x256xf32>
    %36 = vector.multi_reduction <maximumf>, %33, %cst_22 [1] : vector<2x8x256xf32> to vector<2x256xf32>
    %37 = arith.maximumf %28, %36 : vector<2x256xf32>
    %c0_23 = arith.constant 0 : index
    %c16 = arith.constant 16 : index
    %c0_24 = arith.constant 0 : index
    %38 = vector.load %arg1[%c0_23, %c16, %c0_24] : memref<2x32x256xf32, #tpu.memory_space<vmem>>, vector<2x8x256xf32>
    %39 = vector.extract_strided_slice %17 {offsets = [0, 16], sizes = [2, 8], strides = [1, 1]} : vector<2x32xf32> to vector<2x8xf32>
    %40 = vector.shape_cast %39 : vector<2x8xf32> to vector<2x8x1xf32>
    %41 = vector.broadcast %40 : vector<2x8x1xf32> to vector<2x8x256xf32>
    %42 = arith.mulf %38, %41 : vector<2x8x256xf32>
    %cst_25 = arith.constant dense<0.000000e+00> : vector<2x256xf32>
    %43 = vector.multi_reduction <add>, %42, %cst_25 [1] : vector<2x8x256xf32> to vector<2x256xf32>
    %44 = arith.addf %35, %43 : vector<2x256xf32>
    %cst_26 = arith.constant dense<0xFF800000> : vector<2x256xf32>
    %45 = vector.multi_reduction <maximumf>, %42, %cst_26 [1] : vector<2x8x256xf32> to vector<2x256xf32>
    %46 = arith.maximumf %37, %45 : vector<2x256xf32>
    %c0_27 = arith.constant 0 : index
    %c24 = arith.constant 24 : index
    %c0_28 = arith.constant 0 : index
    %47 = vector.load %arg1[%c0_27, %c24, %c0_28] : memref<2x32x256xf32, #tpu.memory_space<vmem>>, vector<2x8x256xf32>
    %48 = vector.extract_strided_slice %17 {offsets = [0, 24], sizes = [2, 8], strides = [1, 1]} : vector<2x32xf32> to vector<2x8xf32>
    %49 = vector.shape_cast %48 : vector<2x8xf32> to vector<2x8x1xf32>
    %50 = vector.broadcast %49 : vector<2x8x1xf32> to vector<2x8x256xf32>
    %51 = arith.mulf %47, %50 : vector<2x8x256xf32>
    %cst_29 = arith.constant dense<0.000000e+00> : vector<2x256xf32>
    %52 = vector.multi_reduction <add>, %51, %cst_29 [1] : vector<2x8x256xf32> to vector<2x256xf32>
    %53 = arith.addf %44, %52 : vector<2x256xf32>
    %cst_30 = arith.constant dense<0xFF800000> : vector<2x256xf32>
    %54 = vector.multi_reduction <maximumf>, %51, %cst_30 [1] : vector<2x8x256xf32> to vector<2x256xf32>
    %55 = arith.maximumf %46, %54 : vector<2x256xf32>
    %cst_31 = arith.constant 3.125000e-02 : f32
    %56 = vector.broadcast %cst_31 : f32 to vector<2x256xf32>
    %57 = arith.mulf %53, %56 : vector<2x256xf32>
    %58 = tpu.concatenate %57, %55 in 1 : vector<2x256xf32>, vector<2x256xf32> -> vector<2x512xf32>
    %c0_32 = arith.constant 0 : index
    %c0_33 = arith.constant 0 : index
    %59 = vector.load %arg4[%c0_32, %c0_33] : memref<512x256xf32, #tpu.memory_space<vmem>>, vector<512x256xf32>
    %cst_34 = arith.constant dense<0.000000e+00> : vector<2x256xf32>
    %60 = tpu.matmul %58, %59, %cst_34 {dimension_numbers = #tpu.dot_dimension_numbers<[1], [0], [0], [1], [0, 0, 1, 1], [], []>} : vector<2x512xf32>, vector<512x256xf32>, vector<2x256xf32> -> vector<2x256xf32>
    %61 = arith.negf %60 : vector<2x256xf32>
    %62 = math.exp %61 : vector<2x256xf32>
    %cst_35 = arith.constant 1.000000e+00 : f32
    %63 = vector.broadcast %cst_35 : f32 to vector<2x256xf32>
    %64 = arith.addf %63, %62 : vector<2x256xf32>
    %65 = arith.divf %63, %64 : vector<2x256xf32>
    %c0_36 = arith.constant 0 : index
    %c0_37 = arith.constant 0 : index
    %c0_38 = arith.constant 0 : index
    %66 = vector.load %arg1[%c0_36, %c0_37, %c0_38] : memref<2x32x256xf32, #tpu.memory_space<vmem>>, vector<2x32x256xf32>
    %67 = vector.shape_cast %17 : vector<2x32xf32> to vector<2x32x1xf32>
    %68 = vector.broadcast %67 : vector<2x32x1xf32> to vector<2x32x256xf32>
    %69 = arith.mulf %66, %68 : vector<2x32x256xf32>
    %70 = vector.shape_cast %65 : vector<2x256xf32> to vector<2x1x256xf32>
    %71 = vector.broadcast %70 : vector<2x1x256xf32> to vector<2x32x256xf32>
    %72 = arith.mulf %69, %71 : vector<2x32x256xf32>
    %c0_39 = arith.constant 0 : index
    %c0_40 = arith.constant 0 : index
    %c0_41 = arith.constant 0 : index
    %73 = vector.load %arg5[%c0_39, %c0_40, %c0_41] : memref<2x32x256xf32, #tpu.memory_space<vmem>>, vector<2x32x256xf32>
    tpu.vector_store %arg5[%c0_39, %c0_40, %c0_41], %72 {strides = array<i32>} : memref<2x32x256xf32, #tpu.memory_space<vmem>>, vector<2x32x256xf32>,
    return
  }
  func.func @transform_0(%arg0: i32) -> (i32, i32, i32) {
    %c0_i32 = arith.constant 0 : i32
    %c0_i32_0 = arith.constant 0 : i32
    %c0_i32_1 = arith.constant 0 : i32
    return %arg0, %c0_i32, %c0_i32_0 : i32, i32, i32
  }
  func.func @transform_1(%arg0: i32) -> (i32, i32) {
    %c0_i32 = arith.constant 0 : i32
    %c0_i32_0 = arith.constant 0 : i32
    %c0_i32_1 = arith.constant 0 : i32
    return %c0_i32, %c0_i32_0 : i32, i32
  }
  func.func @transform_2(%arg0: i32) -> (i32, i32) {
    %c0_i32 = arith.constant 0 : i32
    %c0_i32_0 = arith.constant 0 : i32
    %c0_i32_1 = arith.constant 0 : i32
    return %c0_i32, %c0_i32_0 : i32, i32
  }
  func.func @transform_3(%arg0: i32) -> (i32, i32) {
    %c0_i32 = arith.constant 0 : i32
    %c0_i32_0 = arith.constant 0 : i32
    %c0_i32_1 = arith.constant 0 : i32
    return %c0_i32, %c0_i32_0 : i32, i32
  }
  func.func @transform_4(%arg0: i32) -> (i32, i32, i32) {
    %c0_i32 = arith.constant 0 : i32
    %c0_i32_0 = arith.constant 0 : i32
    %c0_i32_1 = arith.constant 0 : i32
    return %arg0, %c0_i32, %c0_i32_0 : i32, i32, i32
  }
}

</mosaic_0001>

<bundles_post_ra>
// kernel: tpu_custom_call.1
= control target key start
LH: loop header
LB: loop body
LE: loop exit
PB: predicated region body
PF: predicated region fallthrough
CT: control target
= control target key end

     0   :  { %9 = vsyncpa [#allocation3], 0  ;;  %s1655_s0 = inlined_call_operand.hbm [shape: f32[2,32,256], index: 0, kind: input, shape index: {}]   ;;  %s1656_s1 = inlined_call_operand.vmem [shape: f32[32,2], index: 1, kind: input, shape index: {}]   ;;  %s1657_s2 = inlined_call_operand.vmem [shape: f32[2,32], index: 2, kind: input, shape index: {}]   ;;  %s1658_s3 = inlined_call_operand.hbm [shape: f32[512,256], index: 3, kind: input, shape index: {}]   ;;  %s1659_s4 = inlined_call_operand.hbm [shape: f32[2,32,256], index: 4, kind: output, shape index: {}]  }
   0x1   :  { %10 = vsyncpa [#allocation6], 0 }
   0x2   :  { %11 = vsyncpa [#allocation4], 0  ;;  %s1290_s15 = smov [#allocation2]  }
   0x3   :  { %s17_s16 = sshll.u32 %s1290_s15, 4  ;;  %s18_s16 = int_to_ptr.vmem [resolvable:$true] %s17_s16 }
   0x4   :  { %s1232_s17 = scalar_lea.vmem %s18_s16, 2048  ;;  %p1237_p1 = scmp.lt.s32.totalorder %s18_s16, %s18_s16 }
   0x5   :  { %p1233_p0 = scmp.ne.s32.totalorder %s18_s16, %s1232_s17  ;;  %p1238_p2 = scmp.lt.s32.totalorder %s1232_s17, %s1232_s17 }
   0x7   :  { %p1239_p3 = por %p1238_p2, %p1237_p1 }
   0x9   :  { %p1240_p4 = pnand %p1239_p3, %p1233_p0 }
   0xb   :  { %1243 = shalt.err (!%p1240_p4)
}
   0xc   :  { %s1291_s18 = smov 256   ;;  %s1292_s19 = smov 16  }
   0xd   :  { %23 = dma.hbm_to_vmem [thread:$0]  %s1655_s0, 2048, %s18_s16, [#allocation3], %s1291_s18, %s1291_s18, %s1292_s19  }
   0xe   :  { %s1293_s22 = smov [#allocation5]  }
   0xf   :  { %s33_s23 = sshll.u32 %s1293_s22, 4  ;;  %s34_s23 = int_to_ptr.vmem [resolvable:$true] %s33_s23 }
  0x10   :  { %s1252_s24 = scalar_lea.vmem %s34_s23, 16384  ;;  %p1257_p6 = scmp.lt.s32.totalorder %s34_s23, %s34_s23 }
  0x11   :  { %p1253_p5 = scmp.ne.s32.totalorder %s34_s23, %s1252_s24  ;;  %p1258_p7 = scmp.lt.s32.totalorder %s1252_s24, %s1252_s24 }
  0x13   :  { %p1259_p8 = por %p1258_p7, %p1257_p6 }
  0x15   :  { %p1260_p9 = pnand %p1259_p8, %p1253_p5 }
  0x17   :  { %1263 = shalt.err (!%p1260_p9)
}
  0x18   :  { %39 = dma.hbm_to_vmem [thread:$0]  %s1658_s3, 16384, %s34_s23, [#allocation6], %s1291_s18, %s1291_s18, %s1292_s19  }
  0x19   :  { %1284 = dma.done.wait [#allocation3], 2048  }
  0x1a   :  { %1285 = vsyncadd [#allocation3], 4294965248 }
  0x1b   :  { %1286 = dma.done.wait [#allocation6], 16384  }
  0x1c   :  { %1287 = vsyncadd [#allocation6], 4294950912  ;;  %v1294_v0 = vmov 1.0   ;;  %v1337_v1 = vld [vmem:[#allocation2 + $0x8] sm:$0xff]  ;;  %v1340_v2 = vld [vmem:[#allocation2] sm:$0xff]  ;;  %v1295_v17 = vmov 0   ;;  %v211_v56 = vlaneseq }
  0x1d   :  { %1119 = vmatprep.subr.mxu0 %v1294_v0  ;;  %126 = vmatprep.mubr.f32.mxu0 %v1337_v1  ;;  %v1342_v3 = vld [vmem:[#allocation2 + $0x18] sm:$0xff]  ;;  %v1346_v4 = vld [vmem:[#allocation2 + $0x10] sm:$0xff]  ;;  %v1348_v5 = vld [vmem:[#allocation2 + $0x28] sm:$0xff]  ;;  %v1296_v45 = vmov 0.0   ;;  %vm1297_vm0 = vmmov 0   ;;  %vm222_vm1 = vcmask 130112  }
  0x1e   :  { %1120 = vmatpush3.msra.mxu0 %v1294_v0  ;;  %v1352_v6 = vld [vmem:[#allocation2 + $0x20] sm:$0xff]  ;;  %v53_v7 = vld [vmem:[#allocation2 + $0x38] sm:$0xff]  ;;  %v52_v8 = vld [vmem:[#allocation2 + $0x30] sm:$0xff]  ;;  %1208 = vset.pattern.permute.xlu0 %v1295_v17  ;;  %v212_v58 = vand.u32 127, %v211_v56  ;;  %v1398_v63 = vshrl.u32 %v211_v56, 7  ;;  %vm229_vm2 = vcmask 195712  }
  0x1f   :  { %1121 = vmatprep.subr.mxu0 %v1294_v0  ;;  %v1355_v9 = vld [vmem:[#allocation2 + $0x48] sm:$0xff]  ;;  %v1358_v10 = vld [vmem:[#allocation2 + $0x40] sm:$0xff]  ;;  %v1360_v11 = vld [vmem:[#allocation2 + $0x58] sm:$0xff]  ;;  %1209 = vset.pattern.permute.xlu1 %v1295_v17  ;;  %vm236_vm3 = vcmask 261312   ;;  %vm257_vm4 = vcmask 1041409   ;;  %vm259_vm5 = vcmask 261120  }
  0x20   :  { %1122 = vmatpush3.msra.mxu0 %v1294_v0  ;;  %v1364_v12 = vld [vmem:[#allocation2 + $0x50] sm:$0xff]  ;;  %v1366_v13 = vld [vmem:[#allocation2 + $0x68] sm:$0xff]  ;;  %v1370_v14 = vld [vmem:[#allocation2 + $0x60] sm:$0xff]  ;;  %1182 = vmatprep.subr.mxu1 %v1296_v45  ;;  %v217_v60 = vadd.s32 4294967288, %v212_v58  ;;  %v224_v61 = vadd.s32 4294967280, %v212_v58  ;;  %vm338_vm6 = vcmask 1041408  }
  0x21   :  { %1123 = vmatprep.subr.mxu0 %v1294_v0  ;;  %v1372_v15 = vld [vmem:[#allocation2 + $0x78] sm:$0xff]  ;;  %v1376_v16 = vld [vmem:[#allocation2 + $0x70] sm:$0xff]  ;;  %v176_v52 = vld [vmem:[%s1656_s1 + $0x8] sm:$0xff]  ;;  %1190 = vmatprep.mubr.msk.f32.mxu1 %vm1297_vm0, %v1296_v45  ;;  %vm334_vm7 = vcmask 15360  }
  0x22   :  { %1124 = vmatpush3.msra.mxu0 %v1294_v0  ;;  %v178_v46 = vld [vmem:[%s1656_s1 + $0x18] sm:$0xff]  ;;  %v177_v49 = vld [vmem:[%s1656_s1 + $0x10] sm:$0xff]  ;;  %v175_v54 = vld [vmem:[%s1656_s1] sm:$0xff]  ;;  %v227_v17 = vsub.s32 %v224_v61, %v1398_v63 }
  0x23   :  { %1125 = vmatprep.subr.mxu0 %v1294_v0  ;;  %1183 = vmatpush3.msra.mxu1 %v178_v46  ;;  %v817_v46 = vld [vmem:[#allocation5 + $0x2e8] sm:$0xff]  ;;  %v812_v56 = vld [vmem:[#allocation5 + $0x2c0] sm:$0xff]  ;;  %v746_v61 = vld [vmem:[#allocation5 + $0xb0] sm:$0xff] }
  0x24   :  { %1126 = vmatpush3.msra.mxu0 %v1294_v0  ;;  %1184 = vmatprep.subr.mxu1 %v1296_v45 }
  0x25   :  { %1127 = vmatprep.subr.mxu0 %v1294_v0  ;;  %1185 = vmatpush3.msra.mxu1 %v177_v49  ;;  %v753_v49 = vld [vmem:[#allocation5 + $0xe8] sm:$0xff] }
  0x26   :  { %1128 = vmatpush3.msra.mxu0 %v1294_v0  ;;  %1186 = vmatprep.subr.mxu1 %v1296_v45 }
  0x27   :  { %1129 = vmatprep.subr.mxu0 %v1294_v0  ;;  %1187 = vmatpush3.msra.mxu1 %v176_v52  ;;  %v751_v52 = vld [vmem:[#allocation5 + $0xd8] sm:$0xff] }
  0x28   :  { %1130 = vmatpush3.msra.mxu0 %v1294_v0  ;;  %1188 = vmatprep.subr.mxu1 %v1296_v45 }
  0x29   :  { %1131 = vmatprep.subr.mxu0 %v1294_v0  ;;  %1189 = vmatpush3.msra.mxu1 %v175_v54  ;;  %v750_v54 = vld [vmem:[#allocation5 + $0xd0] sm:$0xff] }
  0x2a   :  { %1132 = vmatpush3.msra.mxu0 %v1294_v0  ;;  %1193 = vmatprep.subr.mxu1 %v1296_v45 }
  0x2b   :  { %1133 = vmatprep.subr.mxu0 %v1294_v0 }
  0x2c   :  { %1134 = vmatpush3.msra.mxu0 %v1294_v0 }
  0x2d   :  { %1135 = vmatprep.subr.mxu0 %v1294_v0 }
  0x2e   :  { %1136 = vmatpush3.msra.mxu0 %v1294_v0 }
  0x2f   :  { %1137 = vmatprep.subr.mxu0 %v1294_v0 }
  0x30   :  { %1138 = vmatpush3.msra.mxu0 %v1294_v0 }
  0x31   :  { %1139 = vmatprep.subr.mxu0 %v1294_v0 }
  0x32   :  { %1140 = vmatpush3.msra.mxu0 %v1294_v0 }
  0x33   :  { %1141 = vmatprep.subr.mxu0 %v1294_v0 }
  0x34   :  { %1142 = vmatpush3.msra.mxu0 %v1294_v0 }
  0x35   :  { %1143 = vmatprep.subr.mxu0 %v1294_v0 }
  0x36   :  { %1144 = vmatpush3.msra.mxu0 %v1294_v0 }
  0x37   :  { %1145 = vmatprep.subr.mxu0 %v1294_v0 }
  0x38   :  { %1146 = vmatpush3.msra.mxu0 %v1294_v0 }
  0x39   :  { %1147 = vmatprep.subr.mxu0 %v1294_v0 }
  0x3a   :  { %1148 = vmatpush3.msra.mxu0 %v1294_v0 }
  0x3b   :  { %1149 = vmatprep.subr.mxu0 %v1294_v0 }
  0x3c   :  { %1150 = vmatpush3.msra.mxu0 %v1294_v0  ;;  %v231_v0 = vadd.s32 4294967272, %v212_v58 }
  0x3d   :  { %127 = vmatmul.mubr.f32.vlgmr.msra.gmra.mxu0 %v1340_v2 }
  0x3e   :  { %131 = vmatprep.mubr.f32.mxu0 %v1342_v3 }
  0x41   :  { %132 = vmatmul.mubr.f32.gmra.mxu0 %v1346_v4 }
  0x42   :  { %136 = vmatprep.mubr.f32.mxu0 %v1348_v5 }
  0x45   :  { %137 = vmatmul.mubr.f32.gmra.mxu0 %v1352_v6 }
  0x46   :  { %141 = vmatprep.mubr.f32.mxu0 %v53_v7 }
  0x49   :  { %142 = vmatmul.mubr.f32.gmra.mxu0 %v52_v8  ;;  %v220_v8 = vsub.s32 %v217_v60, %v1398_v63  ;;  %v810_v60 = vld [vmem:[#allocation5 + $0x2b0] sm:$0xff] }
  0x4a   :  { %146 = vmatprep.mubr.f32.mxu0 %v1355_v9 }
  0x4d   :  { %147 = vmatmul.mubr.f32.gmra.mxu0 %v1358_v10 }
  0x4e   :  { %151 = vmatprep.mubr.f32.mxu0 %v1360_v11 }
  0x51   :  { %152 = vmatmul.mubr.f32.gmra.mxu0 %v1364_v12 }
  0x52   :  { %156 = vmatprep.mubr.f32.mxu0 %v1366_v13 }
  0x55   :  { %157 = vmatmul.mubr.f32.gmra.mxu0 %v1370_v14 }
  0x56   :  { %161 = vmatprep.mubr.f32.mxu0 %v1372_v15 }
  0x59   :  { %162 = vmatmul.mubr.f32.gmra.mxu0 %v1376_v16 }
  0xfd   :  { %v1151_v18 = vpop.f32.mrf.mxu0 }
  0xff   :  { %v1152_v19 = vpop.f32.mrf.mxu0 }
 0x100   :  { %v1153_v20 = vadd.f32 %v1152_v19, %v1151_v18  ;;  %v215_v18 = vsub.s32 %v212_v58, %v1398_v63  ;;  %v234_v19 = vsub.s32 %v231_v0, %v1398_v63  ;;  %v811_v58 = vld [vmem:[#allocation5 + $0x2b8] sm:$0xff]  ;;  %v745_v0 = vld [vmem:[#allocation5 + $0xa8] sm:$0xff] }
 0x101   :  { %v1154_v21 = vpop.f32.mrf.mxu0 }
 0x102   :  { %v167_v22 = vmul.f32 0.00390625, %v1153_v20 }
 0x103   :  { %v1155_v23 = vpop.f32.mrf.mxu0 }
 0x104   :  { %v1156_v24 = vadd.f32 %v1155_v23, %v1154_v21  ;;  %188 = vperm.xlu0 %1208, %v167_v22  }
 0x105   :  { %v1157_v25 = vpop.f32.mrf.mxu0 }
 0x106   :  { %v168_v26 = vmul.f32 0.00390625, %v1156_v24 }
 0x107   :  { %v1158_v27 = vpop.f32.mrf.mxu0 }
 0x108   :  { %v1159_v28 = vadd.f32 %v1158_v27, %v1157_v25  ;;  %191 = vperm.xlu0 %1208, %v168_v26  }
 0x109   :  { %v1160_v29 = vpop.f32.mrf.mxu0 }
 0x10a   :  { %v169_v30 = vmul.f32 0.00390625, %v1159_v28 }
 0x10b   :  { %v1161_v31 = vpop.f32.mrf.mxu0 }
 0x10c   :  { %v1162_v32 = vadd.f32 %v1161_v31, %v1160_v29  ;;  %194 = vperm.xlu0 %1208, %v169_v30  }
 0x10d   :  { %v1163_v33 = vpop.f32.mrf.mxu0 }
 0x10e   :  { %v170_v34 = vmul.f32 0.00390625, %v1162_v32 }
 0x10f   :  { %v1164_v35 = vpop.f32.mrf.mxu0 }
 0x110   :  { %v1165_v36 = vadd.f32 %v1164_v35, %v1163_v33  ;;  %197 = vperm.xlu0 %1208, %v170_v34  }
 0x111   :  { %v1166_v37 = vpop.f32.mrf.mxu0 }
 0x112   :  { %v171_v38 = vmul.f32 0.00390625, %v1165_v36 }
 0x113   :  { %v1167_v39 = vpop.f32.mrf.mxu0 }
 0x114   :  { %v1168_v40 = vadd.f32 %v1167_v39, %v1166_v37  ;;  %200 = vperm.xlu1 %1209, %v171_v38   ;;  %v333_v37 = vld [vmem:[%s1657_s2] sm:$0x3]  ;;  %s1299_s2 = smov [#allocation7]  }
 0x115   :  { %v1169_v41 = vpop.f32.mrf.mxu0  ;;  %s1100_s8 = sshll.u32 %s1299_s2, 4  ;;  %s1101_s8 = int_to_ptr.vmem [resolvable:$true] %s1100_s8 }
 0x116   :  { %v172_v42 = vmul.f32 0.00390625, %v1168_v40  ;;  %s1264_s9 = scalar_lea.vmem %s1101_s8, 2048  ;;  %p1269_p11 = scmp.lt.s32.totalorder %s1101_s8, %s1101_s8 }
 0x117   :  { %v1170_v43 = vpop.f32.mrf.mxu0  ;;  %p1265_p10 = scmp.ne.s32.totalorder %s1101_s8, %s1264_s9  ;;  %p1270_p12 = scmp.lt.s32.totalorder %s1264_s9, %s1264_s9 }
 0x118   :  { %v1171_v44 = vadd.f32 %v1170_v43, %v1169_v41  ;;  %203 = vperm.xlu1 %1209, %v172_v42   ;;  %v819_v42 = vld [vmem:[#allocation5 + $0x2f8] sm:$0xff]  ;;  %v818_v43 = vld [vmem:[#allocation5 + $0x2f0] sm:$0xff] }
 0x119   :  { %v1172_v47 = vpop.f32.mrf.mxu0  ;;  %923 = vmatprep.subr.mxu0 %v819_v42  ;;  %v731_v42 = vld [vmem:[#allocation5 + $0x38] sm:$0xff]  ;;  %p1271_p13 = por %p1270_p12, %p1269_p11 }
 0x11a   :  { %v173_v48 = vmul.f32 0.00390625, %v1171_v44  ;;  %v755_v44 = vld [vmem:[#allocation5 + $0xf8] sm:$0xff]  ;;  %924 = vmatpush1.msra.mxu0 %v818_v43  ;;  %v794_v43 = vld [vmem:[#allocation5 + $0x230] sm:$0xff] }
 0x11b   :  { %v1173_v50 = vpop.f32.mrf.mxu0  ;;  %925 = vmatprep.subr.mxu0 %v817_v46  ;;  %v793_v46 = vld [vmem:[#allocation5 + $0x228] sm:$0xff]  ;;  %p1272_p0 = pnand %p1271_p13, %p1265_p10 }
 0x11c   :  { %v1174_v51 = vadd.f32 %v1173_v50, %v1172_v47  ;;  %206 = vperm.xlu1 %1209, %v173_v48   ;;  %v754_v47 = vld [vmem:[#allocation5 + $0xf0] sm:$0xff]  ;;  %v816_v48 = vld [vmem:[#allocation5 + $0x2e0] sm:$0xff]  ;;  %v815_v50 = vld [vmem:[#allocation5 + $0x2d8] sm:$0xff] }
 0x11d   :  { %926 = vmatpush1.msra.mxu0 %v816_v48  ;;  %v792_v48 = vld [vmem:[#allocation5 + $0x220] sm:$0xff] }
 0x11e   :  { %v174_v53 = vmul.f32 0.00390625, %v1174_v51  ;;  %v752_v51 = vld [vmem:[#allocation5 + $0xe0] sm:$0xff]  ;;  %927 = vmatprep.subr.mxu0 %v815_v50  ;;  %v791_v50 = vld [vmem:[#allocation5 + $0x218] sm:$0xff] }
 0x120   :  { %209 = vperm.xlu1 %1209, %v174_v53   ;;  %v813_v53 = vld [vmem:[#allocation5 + $0x2c8] sm:$0xff] }
 0x17f   :  { %v189_v55 = vpop.permute.xlu0 %188 }
 0x180   :  { %v216_v26 = vrot.slane %v189_v55, %v215_v18  ;;  %v749_v55 = vld [vmem:[#allocation5 + $0xc8] sm:$0xff] }
 0x183   :  { %v192_v57 = vpop.permute.xlu0 %191 }
 0x184   :  { %v221_v22 = vrot.slane %v192_v57, %v220_v8  ;;  %v748_v57 = vld [vmem:[#allocation5 + $0xc0] sm:$0xff] }
 0x186   :  { %v223_v30 = vsel %vm222_vm1, %v221_v22, %v216_v26  ;;  %v741_v22 = vld [vmem:[#allocation5 + $0x88] sm:$0xff]  ;;  %v739_v26 = vld [vmem:[#allocation5 + $0x78] sm:$0xff] }
 0x187   :  { %v195_v62 = vpop.permute.xlu0 %194 }
 0x188   :  { %v228_v24 = vrot.slane %v195_v62, %v227_v17  ;;  %v809_v62 = vld [vmem:[#allocation5 + $0x2a8] sm:$0xff] }
 0x18a   :  { %v230_v33 = vsel %vm229_vm2, %v228_v24, %v223_v30  ;;  %v740_v24 = vld [vmem:[#allocation5 + $0x80] sm:$0xff]  ;;  %v737_v30 = vld [vmem:[#allocation5 + $0x68] sm:$0xff] }
 0x18b   :  { %v198_v20 = vpop.permute.xlu0 %197 }
 0x18c   :  { %v235_v27 = vrot.slane %v198_v20, %v234_v19  ;;  %v742_v20 = vld [vmem:[#allocation5 + $0x90] sm:$0xff] }
 0x18e   :  { %v237_v35 = vsel %vm236_vm3, %v235_v27, %v230_v33  ;;  %v802_v27 = vld [vmem:[#allocation5 + $0x270] sm:$0xff]  ;;  %v799_v33 = vld [vmem:[#allocation5 + $0x258] sm:$0xff] }
 0x18f   :  { %v201_v59 = vpop.permute.xlu1 %200 }
 0x190   :  { %v241_v28 = vrot.slane %v201_v59, %v215_v18  ;;  %v747_v59 = vld [vmem:[#allocation5 + $0xb8] sm:$0xff] }
 0x191   :  { %v743_v18 = vld [vmem:[#allocation5 + $0x98] sm:$0xff] }
 0x193   :  { %v204_v7 = vpop.permute.xlu1 %203 }
 0x194   :  { %v245_v23 = vrot.slane %v204_v7, %v220_v8  ;;  %v808_v7 = vld [vmem:[#allocation5 + $0x2a0] sm:$0xff] }
 0x195   :  { %v744_v8 = vld [vmem:[#allocation5 + $0xa0] sm:$0xff] }
 0x196   :  { %v246_v31 = vsel %vm222_vm1, %v245_v23, %v241_v28  ;;  %v804_v23 = vld [vmem:[#allocation5 + $0x280] sm:$0xff]  ;;  %v738_v28 = vld [vmem:[#allocation5 + $0x70] sm:$0xff] }
 0x197   :  { %v207_v21 = vpop.permute.xlu1 %206 }
 0x198   :  { %v250_v25 = vrot.slane %v207_v21, %v227_v17  ;;  %v807_v17 = vld [vmem:[#allocation5 + $0x298] sm:$0xff]  ;;  %v805_v21 = vld [vmem:[#allocation5 + $0x288] sm:$0xff] }
 0x19a   :  { %v251_v34 = vsel %vm229_vm2, %v250_v25, %v246_v31  ;;  %v803_v25 = vld [vmem:[#allocation5 + $0x278] sm:$0xff]  ;;  %v800_v31 = vld [vmem:[#allocation5 + $0x260] sm:$0xff] }
 0x19b   :  { %v210_v29 = vpop.permute.xlu1 %209 }
 0x19c   :  { %v255_v32 = vrot.slane %v210_v29, %v234_v19  ;;  %v806_v19 = vld [vmem:[#allocation5 + $0x290] sm:$0xff]  ;;  %v801_v29 = vld [vmem:[#allocation5 + $0x268] sm:$0xff] }
 0x19e   :  { %v256_v36 = vsel %vm236_vm3, %v255_v32, %v251_v34  ;;  %v736_v32 = vld [vmem:[#allocation5 + $0x60] sm:$0xff]  ;;  %v735_v34 = vld [vmem:[#allocation5 + $0x58] sm:$0xff] }
 0x19f   :  { %v258_v38 = vsel %vm257_vm4, %v256_v36, %v237_v35  ;;  %v798_v35 = vld [vmem:[#allocation5 + $0x250] sm:$0xff] }
 0x1a0   :  { %1191 = vmatmul.mubr.msk.f32.vlgmr.msra.gmra.mxu1 %vm259_vm5, %v258_v38  ;;  %v734_v36 = vld [vmem:[#allocation5 + $0x50] sm:$0xff]  ;;  %v733_v38 = vld [vmem:[#allocation5 + $0x48] sm:$0xff] }
 0x1a1   :  { %1194 = vmatpush3.msk.msra.mxu1 %vm338_vm6, %v333_v37  ;;  %1195 = vmatprep.mubr.msk.f32.mxu1 %vm1297_vm0, %v1296_v45  ;;  %v814_v45 = vld [vmem:[#allocation5 + $0x2d0] sm:$0xff]  ;;  %v797_v37 = vld [vmem:[#allocation5 + $0x248] sm:$0xff] }
 0x1a2   :  { %852 = vmatprep.subr.mxu1 %v755_v44  ;;  %928 = vmatpush1.msra.mxu0 %v814_v45  ;;  %v730_v44 = vld [vmem:[#allocation5 + $0x30] sm:$0xff] }
 0x1a3   :  { %929 = vmatprep.subr.mxu0 %v813_v53  ;;  %v790_v45 = vld [vmem:[#allocation5 + $0x210] sm:$0xff]  ;;  %v789_v53 = vld [vmem:[#allocation5 + $0x208] sm:$0xff] }
 0x1a4   :  { %930 = vmatpush1.msra.mxu0 %v812_v56  ;;  %v724_v56 = vld [vmem:[#allocation5] sm:$0xff] }
 0x1a5   :  { %931 = vmatprep.subr.mxu0 %v811_v58  ;;  %v850_v58 = vld [vmem:[#allocation5 + $0x3f0] sm:$0xff] }
 0x1a6   :  { %932 = vmatpush1.msra.mxu0 %v810_v60 }
 0x1a7   :  { %933 = vmatprep.subr.mxu0 %v809_v62 }
 0x1a8   :  { %934 = vmatpush1.msra.mxu0 %v808_v7  ;;  %v787_v7 = vld [vmem:[#allocation5 + $0x1f8] sm:$0xff] }
 0x1a9   :  { %935 = vmatprep.subr.mxu0 %v807_v17  ;;  %v786_v17 = vld [vmem:[#allocation5 + $0x1f0] sm:$0xff] }
 0x1aa   :  { %936 = vmatpush1.msra.mxu0 %v806_v19  ;;  %v785_v19 = vld [vmem:[#allocation5 + $0x1e8] sm:$0xff] }
 0x1ab   :  { %937 = vmatprep.subr.mxu0 %v805_v21  ;;  %v784_v21 = vld [vmem:[#allocation5 + $0x1e0] sm:$0xff] }
 0x1ac   :  { %938 = vmatpush1.msra.mxu0 %v804_v23  ;;  %v1411_v23 = vsub.s32 1, %v1398_v63 }
 0x1ad   :  { %939 = vmatprep.subr.mxu0 %v803_v25 }
 0x1ae   :  { %940 = vmatpush1.msra.mxu0 %v802_v27 }
 0x1af   :  { %941 = vmatprep.subr.mxu0 %v801_v29  ;;  %v845_v29 = vld [vmem:[#allocation5 + $0x3c8] sm:$0xff] }
 0x1b0   :  { %942 = vmatpush1.msra.mxu0 %v800_v31  ;;  %v844_v31 = vld [vmem:[#allocation5 + $0x3c0] sm:$0xff] }
 0x1b1   :  { %943 = vmatprep.subr.mxu0 %v799_v33  ;;  %v843_v33 = vld [vmem:[#allocation5 + $0x3b8] sm:$0xff] }
 0x1b2   :  { %944 = vmatpush1.msra.mxu0 %v798_v35  ;;  %v842_v35 = vld [vmem:[#allocation5 + $0x3b0] sm:$0xff] }
 0x1b3   :  { %945 = vmatprep.subr.mxu0 %v797_v37  ;;  %v841_v37 = vld [vmem:[#allocation5 + $0x3a8] sm:$0xff] }
 0x260   :  { %v328_v39 = vpop.f32.mrf.mxu1 }
 0x261   :  { %v332_v40 = vmax.f32 %v328_v39, 0.0  ;;  %v796_v39 = vld [vmem:[#allocation5 + $0x240] sm:$0xff] }
 0x262   :  { %v1192_v41 = vpop.f32.mrf.mxu1  ;;  %946 = vmatpush1.msra.mxu0 %v796_v39  ;;  %v840_v39 = vld [vmem:[#allocation5 + $0x3a0] sm:$0xff] }
 0x263   :  { %1196 = vmatmul.mubr.msk.f32.vlgmr.msra.gmra.mxu1 %vm334_vm7, %v332_v40  ;;  %v732_v40 = vld [vmem:[#allocation5 + $0x40] sm:$0xff]  ;;  %v795_v41 = vld [vmem:[#allocation5 + $0x238] sm:$0xff] }
 0x264   :  { %853 = vmatpush1.msra.mxu1 %v754_v47  ;;  %v729_v47 = vld [vmem:[#allocation5 + $0x28] sm:$0xff]  ;;  %947 = vmatprep.subr.mxu0 %v795_v41  ;;  %v839_v41 = vld [vmem:[#allocation5 + $0x398] sm:$0xff] }
 0x265   :  { %854 = vmatprep.subr.mxu1 %v753_v49  ;;  %v728_v49 = vld [vmem:[#allocation5 + $0x20] sm:$0xff]  ;;  %948 = vmatpush1.msra.mxu0 %v794_v43  ;;  %v838_v43 = vld [vmem:[#allocation5 + $0x390] sm:$0xff] }
 0x266   :  { %855 = vmatpush1.msra.mxu1 %v752_v51  ;;  %v727_v51 = vld [vmem:[#allocation5 + $0x18] sm:$0xff]  ;;  %949 = vmatprep.subr.mxu0 %v793_v46  ;;  %v837_v46 = vld [vmem:[#allocation5 + $0x388] sm:$0xff] }
 0x267   :  { %856 = vmatprep.subr.mxu1 %v751_v52  ;;  %v726_v52 = vld [vmem:[#allocation5 + $0x10] sm:$0xff]  ;;  %950 = vmatpush1.msra.mxu0 %v792_v48  ;;  %v836_v48 = vld [vmem:[#allocation5 + $0x380] sm:$0xff] }
 0x268   :  { %857 = vmatpush1.msra.mxu1 %v750_v54  ;;  %v725_v54 = vld [vmem:[#allocation5 + $0x8] sm:$0xff]  ;;  %951 = vmatprep.subr.mxu0 %v791_v50  ;;  %v835_v50 = vld [vmem:[#allocation5 + $0x378] sm:$0xff] }
 0x269   :  { %858 = vmatprep.subr.mxu1 %v749_v55  ;;  %v788_v55 = vld [vmem:[#allocation5 + $0x200] sm:$0xff]  ;;  %952 = vmatpush1.msra.mxu0 %v790_v45  ;;  %v834_v45 = vld [vmem:[#allocation5 + $0x370] sm:$0xff] }
 0x26a   :  { %859 = vmatpush1.msra.mxu1 %v748_v57  ;;  %v851_v57 = vld [vmem:[#allocation5 + $0x3f8] sm:$0xff]  ;;  %953 = vmatprep.subr.mxu0 %v789_v53  ;;  %v833_v53 = vld [vmem:[#allocation5 + $0x368] sm:$0xff] }
 0x26b   :  { %860 = vmatprep.subr.mxu1 %v747_v59  ;;  %954 = vmatpush1.msra.mxu0 %v788_v55  ;;  %v832_v55 = vld [vmem:[#allocation5 + $0x360] sm:$0xff] }
 0x26c   :  { %861 = vmatpush1.msra.mxu1 %v746_v61  ;;  %955 = vmatprep.subr.mxu0 %v851_v57  ;;  %v831_v57 = vld [vmem:[#allocation5 + $0x358] sm:$0xff] }
 0x26d   :  { %862 = vmatprep.subr.mxu1 %v745_v0  ;;  %956 = vmatpush2.msra.mxu0 %v850_v58  ;;  %v768_v58 = vld [vmem:[#allocation5 + $0x160] sm:$0xff] }
 0x26e   :  { %863 = vmatpush1.msra.mxu1 %v744_v8  ;;  %v849_v8 = vld [vmem:[#allocation5 + $0x3e8] sm:$0xff] }
 0x26f   :  { %864 = vmatprep.subr.mxu1 %v743_v18  ;;  %957 = vmatprep.subr.mxu0 %v849_v8  ;;  %v848_v18 = vld [vmem:[#allocation5 + $0x3e0] sm:$0xff]  ;;  %v827_v8 = vld [vmem:[#allocation5 + $0x338] sm:$0xff] }
 0x270   :  { %865 = vmatpush1.msra.mxu1 %v742_v20  ;;  %958 = vmatpush2.msra.mxu0 %v848_v18  ;;  %v847_v20 = vld [vmem:[#allocation5 + $0x3d8] sm:$0xff]  ;;  %v826_v18 = vld [vmem:[#allocation5 + $0x330] sm:$0xff] }
 0x271   :  { %866 = vmatprep.subr.mxu1 %v741_v22  ;;  %959 = vmatprep.subr.mxu0 %v847_v20  ;;  %v846_v22 = vld [vmem:[#allocation5 + $0x3d0] sm:$0xff]  ;;  %v825_v20 = vld [vmem:[#allocation5 + $0x328] sm:$0xff] }
 0x272   :  { %867 = vmatpush1.msra.mxu1 %v740_v24  ;;  %960 = vmatpush2.msra.mxu0 %v846_v22  ;;  %v1414_v24 = vsub.s32 0, %v1398_v63  ;;  %v824_v22 = vld [vmem:[#allocation5 + $0x320] sm:$0xff] }
 0x273   :  { %868 = vmatprep.subr.mxu1 %v739_v26  ;;  %961 = vmatprep.subr.mxu0 %v845_v29  ;;  %v759_v29 = vld [vmem:[#allocation5 + $0x118] sm:$0xff] }
 0x274   :  { %869 = vmatpush1.msra.mxu1 %v738_v28  ;;  %v783_v28 = vld [vmem:[#allocation5 + $0x1d8] sm:$0xff]  ;;  %962 = vmatpush2.msra.mxu0 %v844_v31  ;;  %v758_v31 = vld [vmem:[#allocation5 + $0x110] sm:$0xff] }
 0x275   :  { %870 = vmatprep.subr.mxu1 %v737_v30  ;;  %v782_v30 = vld [vmem:[#allocation5 + $0x1d0] sm:$0xff]  ;;  %963 = vmatprep.subr.mxu0 %v843_v33  ;;  %v757_v33 = vld [vmem:[#allocation5 + $0x108] sm:$0xff] }
 0x276   :  { %871 = vmatpush1.msra.mxu1 %v736_v32  ;;  %v781_v32 = vld [vmem:[#allocation5 + $0x1c8] sm:$0xff]  ;;  %964 = vmatpush2.msra.mxu0 %v842_v35 }
 0x277   :  { %872 = vmatprep.subr.mxu1 %v735_v34  ;;  %v780_v34 = vld [vmem:[#allocation5 + $0x1c0] sm:$0xff]  ;;  %965 = vmatprep.subr.mxu0 %v841_v37 }
 0x278   :  { %873 = vmatpush1.msra.mxu1 %v734_v36  ;;  %v779_v36 = vld [vmem:[#allocation5 + $0x1b8] sm:$0xff]  ;;  %966 = vmatpush2.msra.mxu0 %v840_v39 }
 0x279   :  { %874 = vmatprep.subr.mxu1 %v733_v38  ;;  %v778_v38 = vld [vmem:[#allocation5 + $0x1b0] sm:$0xff]  ;;  %967 = vmatprep.subr.mxu0 %v839_v41 }
 0x27a   :  { %875 = vmatpush1.msra.mxu1 %v732_v40  ;;  %v777_v40 = vld [vmem:[#allocation5 + $0x1a8] sm:$0xff]  ;;  %968 = vmatpush2.msra.mxu0 %v838_v43 }
 0x27b   :  { %876 = vmatprep.subr.mxu1 %v731_v42  ;;  %v776_v42 = vld [vmem:[#allocation5 + $0x1a0] sm:$0xff]  ;;  %969 = vmatprep.subr.mxu0 %v837_v46 }
 0x27c   :  { %877 = vmatpush1.msra.mxu1 %v730_v44  ;;  %v775_v44 = vld [vmem:[#allocation5 + $0x198] sm:$0xff]  ;;  %970 = vmatpush2.msra.mxu0 %v836_v48 }
 0x27d   :  { %878 = vmatprep.subr.mxu1 %v729_v47  ;;  %v774_v47 = vld [vmem:[#allocation5 + $0x190] sm:$0xff]  ;;  %971 = vmatprep.subr.mxu0 %v835_v50 }
 0x27e   :  { %879 = vmatpush1.msra.mxu1 %v728_v49  ;;  %v773_v49 = vld [vmem:[#allocation5 + $0x188] sm:$0xff]  ;;  %972 = vmatpush2.msra.mxu0 %v834_v45 }
 0x27f   :  { %880 = vmatprep.subr.mxu1 %v727_v51  ;;  %v772_v51 = vld [vmem:[#allocation5 + $0x180] sm:$0xff]  ;;  %973 = vmatprep.subr.mxu0 %v833_v53 }
 0x280   :  { %881 = vmatpush1.msra.mxu1 %v726_v52  ;;  %v771_v52 = vld [vmem:[#allocation5 + $0x178] sm:$0xff]  ;;  %974 = vmatpush2.msra.mxu0 %v832_v55 }
 0x281   :  { %882 = vmatprep.subr.mxu1 %v725_v54  ;;  %v770_v54 = vld [vmem:[#allocation5 + $0x170] sm:$0xff]  ;;  %975 = vmatprep.subr.mxu0 %v831_v57 }
 0x282   :  { %883 = vmatpush1.msra.mxu1 %v724_v56  ;;  %v769_v56 = vld [vmem:[#allocation5 + $0x168] sm:$0xff] }
 0x283   :  { %884 = vmatprep.subr.mxu1 %v787_v7  ;;  %v765_v7 = vld [vmem:[#allocation5 + $0x148] sm:$0xff] }
 0x284   :  { %885 = vmatpush2.msra.mxu1 %v786_v17  ;;  %v764_v17 = vld [vmem:[#allocation5 + $0x140] sm:$0xff] }
 0x285   :  { %886 = vmatprep.subr.mxu1 %v785_v19  ;;  %v763_v19 = vld [vmem:[#allocation5 + $0x138] sm:$0xff] }
 0x286   :  { %887 = vmatpush2.msra.mxu1 %v784_v21  ;;  %v762_v21 = vld [vmem:[#allocation5 + $0x130] sm:$0xff] }
 0x287   :  { %888 = vmatprep.subr.mxu1 %v783_v28  ;;  %v822_v28 = vld [vmem:[#allocation5 + $0x310] sm:$0xff] }
 0x288   :  { %889 = vmatpush2.msra.mxu1 %v782_v30  ;;  %v821_v30 = vld [vmem:[#allocation5 + $0x308] sm:$0xff] }
 0x289   :  { %890 = vmatprep.subr.mxu1 %v781_v32  ;;  %v820_v32 = vld [vmem:[#allocation5 + $0x300] sm:$0xff] }
 0x28a   :  { %891 = vmatpush2.msra.mxu1 %v780_v34  ;;  %v756_v34 = vld [vmem:[#allocation5 + $0x100] sm:$0xff] }
 0x28b   :  { %892 = vmatprep.subr.mxu1 %v779_v36 }
 0x28c   :  { %893 = vmatpush2.msra.mxu1 %v778_v38 }
 0x28d   :  { %894 = vmatprep.subr.mxu1 %v777_v40 }
 0x28e   :  { %895 = vmatpush2.msra.mxu1 %v776_v42 }
 0x28f   :  { %896 = vmatprep.subr.mxu1 %v775_v44 }
 0x290   :  { %897 = vmatpush2.msra.mxu1 %v774_v47 }
 0x291   :  { %898 = vmatprep.subr.mxu1 %v773_v49 }
 0x292   :  { %899 = vmatpush2.msra.mxu1 %v772_v51 }
 0x293   :  { %900 = vmatprep.subr.mxu1 %v771_v52 }
 0x294   :  { %901 = vmatpush2.msra.mxu1 %v770_v54 }
 0x295   :  { %902 = vmatprep.subr.mxu1 %v769_v56 }
 0x296   :  { %903 = vmatpush2.msra.mxu1 %v768_v58 }
 0x323   :  { %v408_v59 = vpop.f32.mrf.mxu1 }
 0x324   :  { %v1116_v60 = vmul.f32 -1.442695, %v408_v59  ;;  %v830_v59 = vld [vmem:[#allocation5 + $0x350] sm:$0xff] }
 0x325   :  { %v1197_v61 = vpop.f32.mrf.mxu1  ;;  %976 = vmatpush2.msra.mxu0 %v830_v59 }
 0x326   :  { %1210 = vpow2.f32 %v1116_v60  ;;  %v767_v60 = vld [vmem:[#allocation5 + $0x158] sm:$0xff]  ;;  %v829_v61 = vld [vmem:[#allocation5 + $0x348] sm:$0xff] }
 0x327   :  { %904 = vmatprep.subr.mxu1 %v767_v60  ;;  %977 = vmatprep.subr.mxu0 %v829_v61 }
 0x333   :  { %v1211_v62 = vpop.eup %1210 }
 0x334   :  { %v415_v0 = vadd.f32 1.0, %v1211_v62  ;;  %v766_v62 = vld [vmem:[#allocation5 + $0x150] sm:$0xff] }
 0x335   :  { %905 = vmatpush2.msra.mxu1 %v766_v62 }
 0x336   :  { %1212 = vrcp.f32 %v415_v0  ;;  %v828_v0 = vld [vmem:[#allocation5 + $0x340] sm:$0xff]  ;;  %906 = vmatprep.subr.mxu1 %v765_v7 }
 0x337   :  { %978 = vmatpush2.msra.mxu0 %v828_v0  ;;  %907 = vmatpush2.msra.mxu1 %v764_v17 }
 0x338   :  { %979 = vmatprep.subr.mxu0 %v827_v8  ;;  %908 = vmatprep.subr.mxu1 %v763_v19 }
 0x339   :  { %980 = vmatpush2.msra.mxu0 %v826_v18  ;;  %909 = vmatpush2.msra.mxu1 %v762_v21 }
 0x33a   :  { %981 = vmatprep.subr.mxu0 %v825_v20 }
 0x33b   :  { %982 = vmatpush2.msra.mxu0 %v824_v22 }
 0x343   :  { %v1213_v25 = vpop.eup %1212 }
 0x344   :  { %v432_v26 = vrot.slane %v1213_v25, %v1411_v23  ;;  %v425_v27 = vrot.slane %v1213_v25, %v1414_v24  ;;  %v761_v25 = vld [vmem:[#allocation5 + $0x128] sm:$0xff] }
 0x345   :  { %910 = vmatprep.subr.mxu1 %v761_v25 }
 0x346   :  { %434 = vbcast.lane.b32.xlu1 %v432_v26, 256  ;;  %427 = vbcast.lane.b32.xlu0 %v425_v27, 256 }
 0x34a   :  { %502 = vbcast.lane.b32.xlu1 %v432_v26, 264  ;;  %498 = vbcast.lane.b32.xlu0 %v425_v27, 264 }
 0x34e   :  { %574 = vbcast.lane.b32.xlu1 %v432_v26, 272  ;;  %570 = vbcast.lane.b32.xlu0 %v425_v27, 272 }
 0x352   :  { %642 = vbcast.lane.b32.xlu1 %v432_v26, 280  ;;  %638 = vbcast.lane.b32.xlu0 %v425_v27, 280  ;;  %v823_v26 = vld [vmem:[#allocation5 + $0x318] sm:$0xff]  ;;  %v760_v27 = vld [vmem:[#allocation5 + $0x120] sm:$0xff] }
 0x353   :  { %983 = vmatprep.subr.mxu0 %v823_v26  ;;  %911 = vmatpush2.msra.mxu1 %v760_v27 }
 0x354   :  { %984 = vmatpush2.msra.mxu0 %v822_v28  ;;  %912 = vmatprep.subr.mxu1 %v759_v29 }
 0x355   :  { %985 = vmatprep.subr.mxu0 %v821_v30  ;;  %913 = vmatpush2.msra.mxu1 %v758_v31 }
 0x356   :  { %986 = vmatpush2.msra.mxu0 %v820_v32  ;;  %914 = vmatprep.subr.mxu1 %v757_v33 }
 0x357   :  { %915 = vmatpush2.msra.mxu1 %v756_v34 }
 0x3b8   :  { %v435_v35 = vpop.permute.xlu1 %434  ;;  %v428_v36 = vpop.permute.xlu0 %427 }
 0x3b9   :  { %v1419_v37 = vmul.f32 %v435_v35, %v1358_v10  ;;  %v1422_v38 = vmul.f32 %v435_v35, %v1355_v9  ;;  %v1425_v39 = vmul.f32 %v428_v36, %v1340_v2  ;;  %v1428_v40 = vmul.f32 %v428_v36, %v1337_v1 }
 0x3bb   :  { %1672 = vst [vmem:[#allocation11_spill] sm:$0xff] %v1419_v37  ;;  %1673 = vst [vmem:[#allocation12_spill] sm:$0xff] %v1422_v38  ;;  %v452_v41 = vrot.slane %v1419_v37, 4  ;;  %v458_v42 = vrot.slane %v1422_v38, 4  ;;  %v440_v43 = vrot.slane %v1425_v39, 4  ;;  %v446_v44 = vrot.slane %v1428_v40, 4 }
 0x3bc   :  { %v503_v50 = vpop.permute.xlu1 %502  ;;  %v499_v7 = vpop.permute.xlu0 %498 }
 0x3bd   :  { %v453_v10 = vadd.f32 %v452_v41, %v1419_v37  ;;  %v459_v46 = vadd.f32 %v458_v42, %v1422_v38  ;;  %v481_v9 = vmax.f32 %v1419_v37, %v452_v41  ;;  %v487_v2 = vmax.f32 %v1422_v38, %v458_v42 }
 0x3be   :  { %v441_v47 = vadd.f32 %v440_v43, %v1425_v39  ;;  %v447_v1 = vadd.f32 %v446_v44, %v1428_v40  ;;  %v469_v48 = vmax.f32 %v1425_v39, %v440_v43  ;;  %v475_v49 = vmax.f32 %v1428_v40, %v446_v44 }
 0x3bf   :  { %v454_v51 = vrot.slane %v453_v10, 2  ;;  %v460_v45 = vrot.slane %v459_v46, 2  ;;  %v482_v52 = vrot.slane %v481_v9, 2  ;;  %v488_v53 = vrot.slane %v487_v2, 2 }
 0x3c0   :  { %v442_v54 = vrot.slane %v441_v47, 2  ;;  %v448_v55 = vrot.slane %v447_v1, 2  ;;  %v470_v56 = vrot.slane %v469_v48, 2  ;;  %v476_v57 = vrot.slane %v475_v49, 2  ;;  %v575_v26 = vpop.permute.xlu1 %574 }
 0x3c1   :  { %v1442_v58 = vadd.f32 %v454_v51, %v453_v10  ;;  %v1444_v59 = vadd.f32 %v460_v45, %v459_v46  ;;  %v483_v60 = vmax.f32 %v481_v9, %v482_v52  ;;  %v1450_v17 = vmax.f32 %v487_v2, %v488_v53 }
 0x3c2   :  { %v1446_v61 = vadd.f32 %v442_v54, %v441_v47  ;;  %v1448_v62 = vadd.f32 %v448_v55, %v447_v1  ;;  %v471_v0 = vmax.f32 %v469_v48, %v470_v56  ;;  %v1452_v18 = vmax.f32 %v475_v49, %v476_v57 }
 0x3c3   :  { %v484_v8 = vrot.slane %v483_v60, 1  ;;  %v1455_v19 = vmul.f32 %v503_v50, %v1364_v12  ;;  %v1460_v25 = vmul.f32 %v503_v50, %v1360_v11  ;;  %v1466_v30 = vmul.f32 %v499_v7, %v1346_v4 }
 0x3c4   :  { %v472_v22 = vrot.slane %v471_v0, 1  ;;  %v1474_v33 = vmul.f32 %v499_v7, %v1342_v3  ;;  %v1480_v36 = vmul.f32 %v575_v26, %v1370_v14  ;;  %v1486_v43 = vmul.f32 %v575_v26, %v1366_v13 }
 0x3c5   :  { %1674 = vst [vmem:[#allocation13_spill] sm:$0xff] %v1455_v19  ;;  %1675 = vst [vmem:[#allocation14_spill] sm:$0xff] %v1460_v25  ;;  %v520_v29 = vrot.slane %v1455_v19, 4  ;;  %v1468_v12 = vmax.f32 %v483_v60, %v484_v8  ;;  %v526_v32 = vrot.slane %v1460_v25, 4  ;;  %v508_v35 = vrot.slane %v1466_v30, 4  ;;  %v571_v8 = vpop.permute.xlu0 %570 }
 0x3c6   :  { %v1470_v31 = vmax.f32 %v471_v0, %v472_v22  ;;  %1676 = vst [vmem:[#allocation15_spill] sm:$0xff] %v1480_v36  ;;  %v514_v42 = vrot.slane %v1474_v33, 4  ;;  %1677 = vst [vmem:[#allocation16_spill] sm:$0xff] %v1486_v43  ;;  %v592_v7 = vrot.slane %v1480_v36, 4 }
 0x3c7   :  { %v521_v11 = vadd.f32 %v520_v29, %v1455_v19  ;;  %v549_v34 = vmax.f32 %v1455_v19, %v520_v29  ;;  %v527_v4 = vadd.f32 %v526_v32, %v1460_v25  ;;  %v555_v41 = vmax.f32 %v1460_v25, %v526_v32 }
 0x3c8   :  { %v509_v10 = vadd.f32 %v508_v35, %v1466_v30  ;;  %v537_v46 = vmax.f32 %v1466_v30, %v508_v35  ;;  %v515_v14 = vadd.f32 %v514_v42, %v1474_v33  ;;  %v543_v47 = vmax.f32 %v1474_v33, %v514_v42 }
 0x3c9   :  { %v522_v3 = vrot.slane %v521_v11, 2  ;;  %v550_v44 = vrot.slane %v549_v34, 2  ;;  %v528_v9 = vrot.slane %v527_v4, 2  ;;  %v556_v2 = vrot.slane %v555_v41, 2 }
 0x3ca   :  { %v510_v49 = vrot.slane %v509_v10, 2  ;;  %v538_v50 = vrot.slane %v537_v46, 2  ;;  %v516_v45 = vrot.slane %v515_v14, 2  ;;  %v544_v52 = vrot.slane %v543_v47, 2 }
 0x3cb   :  { %v523_v1 = vadd.f32 %v522_v3, %v521_v11  ;;  %v551_v48 = vmax.f32 %v549_v34, %v550_v44  ;;  %v1492_v51 = vadd.f32 %v528_v9, %v527_v4  ;;  %v1494_v13 = vmax.f32 %v555_v41, %v556_v2  ;;  %v643_v41 = vpop.permute.xlu1 %642 }
 0x3cc   :  { %v511_v55 = vadd.f32 %v510_v49, %v509_v10  ;;  %v539_v56 = vmax.f32 %v537_v46, %v538_v50  ;;  %v1497_v60 = vadd.f32 %v516_v45, %v515_v14  ;;  %v1499_v0 = vmax.f32 %v543_v47, %v544_v52 }
 0x3cd   :  { %v524_v53 = vrot.slane %v523_v1, 1  ;;  %v552_v54 = vrot.slane %v551_v48, 1  ;;  %v593_v34 = vadd.f32 %v592_v7, %v1480_v36  ;;  %v598_v35 = vrot.slane %v1486_v43, 4 }
 0x3ce   :  { %v512_v29 = vrot.slane %v511_v55, 1  ;;  %v540_v32 = vrot.slane %v539_v56, 1  ;;  %v621_v4 = vmax.f32 %v1480_v36, %v592_v7  ;;  %v1515_v44 = vmul.f32 %v571_v8, %v1352_v6 }
 0x3cf   :  { %v1502_v22 = vadd.f32 %v524_v53, %v523_v1  ;;  %v1504_v26 = vmax.f32 %v551_v48, %v552_v54  ;;  %v1518_v10 = vmul.f32 %v571_v8, %v1348_v5  ;;  %v594_v46 = vrot.slane %v593_v34, 2 }
 0x3d0   :  { %v1510_v42 = vadd.f32 %v512_v29, %v511_v55  ;;  %v1512_v3 = vmax.f32 %v539_v56, %v540_v32  ;;  %1678 = vst [vmem:[#allocation17_spill] sm:$0xff] %v1515_v44  ;;  %v599_v9 = vadd.f32 %v598_v35, %v1486_v43  ;;  %v622_v2 = vrot.slane %v621_v4, 2  ;;  %v1223_v56 = vld [vmem:[#allocation2 + $0x38] sm:$0xff] }
 0x3d1   :  { %1679 = vst [vmem:[#allocation18_spill] sm:$0xff] %v1518_v10  ;;  %v1522_v14 = vmax.f32 %v1486_v43, %v598_v35  ;;  %v580_v47 = vrot.slane %v1515_v44, 4  ;;  %v586_v1 = vrot.slane %v1518_v10, 4  ;;  %v1527_v48 = vmul.f32 %v643_v41, %v1376_v16  ;;  %v639_v16 = vpop.permute.xlu0 %638 }
 0x3d2   :  { %v1530_v6 = vmul.f32 %v643_v41, %v1372_v15  ;;  %v1532_v49 = vadd.f32 %v594_v46, %v593_v34  ;;  %v600_v5 = vrot.slane %v599_v9, 2  ;;  %v1534_v50 = vmax.f32 %v621_v4, %v622_v2  ;;  %v1222_v2 = vld [vmem:[#allocation2 + $0x30] sm:$0xff] }
 0x3d3   :  { %1680 = vst [vmem:[#allocation19_spill] sm:$0xff] %v1527_v48  ;;  %v628_v45 = vrot.slane %v1522_v14, 2  ;;  %v581_v52 = vadd.f32 %v580_v47, %v1515_v44  ;;  %v587_v53 = vadd.f32 %v586_v1, %v1518_v10  ;;  %v609_v54 = vmax.f32 %v1515_v44, %v580_v47 }
 0x3d4   :  { %1681 = vst [vmem:[#allocation20_spill] sm:$0xff] %v1530_v6  ;;  %v615_v55 = vmax.f32 %v1518_v10, %v586_v1  ;;  %v1542_v15 = vadd.f32 %v600_v5, %v599_v9  ;;  %v660_v8 = vrot.slane %v1527_v48, 4  ;;  %v666_v41 = vrot.slane %v1530_v6, 4 }
 0x3d5   :  { %v582_v29 = vrot.slane %v581_v52, 2  ;;  %v588_v32 = vrot.slane %v587_v53, 2  ;;  %v610_v34 = vrot.slane %v609_v54, 2  ;;  %v1549_v47 = vmul.f32 %v1222_v2, %v639_v16 }
 0x3d6   :  { %v616_v35 = vrot.slane %v615_v55, 2  ;;  %v661_v4 = vadd.f32 %v660_v8, %v1527_v48  ;;  %v689_v46 = vmax.f32 %v1527_v48, %v660_v8  ;;  %v1555_v27 = vmul.f32 %v1223_v56, %v639_v16 }
 0x3d7   :  { %1682 = vst [vmem:[#allocation21_spill] sm:$0xff] %v1549_v47  ;;  %v1551_v1 = vadd.f32 %v582_v29, %v581_v52  ;;  %v1553_v9 = vadd.f32 %v588_v32, %v587_v53  ;;  %v611_v5 = vmax.f32 %v609_v54, %v610_v34  ;;  %v667_v57 = vadd.f32 %v666_v41, %v1530_v6 }
 0x3d8   :  { %1683 = vst [vmem:[#allocation22_spill] sm:$0xff] %v1555_v27  ;;  %v662_v20 = vrot.slane %v661_v4, 2  ;;  %v690_v11 = vrot.slane %v689_v46, 2  ;;  %v695_v21 = vmax.f32 %v1530_v6, %v666_v41  ;;  %v648_v2 = vrot.slane %v1549_v47, 4 }
 0x3d9   :  { %v612_v8 = vrot.slane %v611_v5, 1  ;;  %v654_v52 = vrot.slane %v1555_v27, 4  ;;  %v668_v53 = vrot.slane %v667_v57, 2  ;;  %v478_v6 = vrot.slane %v1452_v18, 1 }
 0x3da   :  { %v1562_v29 = vadd.f32 %v662_v20, %v661_v4  ;;  %v691_v54 = vmax.f32 %v689_v46, %v690_v11  ;;  %v696_v32 = vrot.slane %v695_v21, 2  ;;  %v649_v16 = vadd.f32 %v648_v2, %v1549_v47 }
 0x3db   :  { %v655_v56 = vadd.f32 %v654_v52, %v1555_v27  ;;  %v677_v34 = vmax.f32 %v1549_v47, %v648_v2  ;;  %v683_v41 = vmax.f32 %v1555_v27, %v654_v52  ;;  %v1568_v7 = vadd.f32 %v668_v53, %v667_v57 }
 0x3dc   :  { %v692_v28 = vrot.slane %v691_v54, 1  ;;  %v490_v48 = vrot.slane %v1450_v17, 1  ;;  %v650_v20 = vrot.slane %v649_v16, 2  ;;  %v479_v46 = vmax.f32 %v1452_v18, %v478_v6 }
 0x3dd   :  { %v656_v4 = vrot.slane %v655_v56, 2  ;;  %v678_v43 = vrot.slane %v677_v34, 2  ;;  %v684_v11 = vrot.slane %v683_v41, 2  ;;  %v546_v25 = vrot.slane %v1499_v0, 1 }
 0x3de   :  { %v491_v36 = vmax.f32 %v1450_v17, %v490_v48  ;;  %v558_v2 = vrot.slane %v1494_v13, 1  ;;  %v1576_v52 = vadd.f32 %v650_v20, %v649_v16  ;;  %v617_v19 = vmax.f32 %v615_v55, %v616_v35 }
 0x3df   :  { %v657_v57 = vadd.f32 %v656_v4, %v655_v56  ;;  %v679_v53 = vmax.f32 %v677_v34, %v678_v43  ;;  %v547_v38 = vmax.f32 %v1499_v0, %v546_v25  ;;  %v629_v27 = vmax.f32 %v1522_v14, %v628_v45 }
 0x3e0   :  { %v559_v37 = vmax.f32 %v1494_v13, %v558_v2  ;;  %v685_v47 = vmax.f32 %v683_v41, %v684_v11  ;;  %v618_v18 = vrot.slane %v617_v19, 1  ;;  %v697_v6 = vmax.f32 %v695_v21, %v696_v32 }
 0x3e1   :  { %v680_v10 = vrot.slane %v679_v53, 1  ;;  %v560_v17 = vmax.f32 %v1470_v31, %v1512_v3  ;;  %v561_v48 = vmax.f32 %v479_v46, %v547_v38  ;;  %v630_v16 = vrot.slane %v629_v27, 1 }
 0x3e2   :  { %v563_v44 = vmax.f32 %v491_v36, %v559_v37  ;;  %v686_v20 = vrot.slane %v685_v47, 1  ;;  %v619_v56 = vmax.f32 %v617_v19, %v618_v18  ;;  %v698_v43 = vrot.slane %v697_v6, 1 }
 0x3e3   :  { %v562_v25 = vmax.f32 %v1468_v12, %v1504_v26  ;;  %v613_v0 = vmax.f32 %v611_v5, %v612_v8  ;;  %v631_v13 = vmax.f32 %v629_v27, %v630_v16  ;;  %v1684_v14 = vrot.slane %v1534_v50, 1 }
 0x3e4   :  { %v687_v55 = vmax.f32 %v685_v47, %v686_v20  ;;  %v681_v21 = vmax.f32 %v679_v53, %v680_v10  ;;  %v633_v35 = vmax.f32 %v561_v48, %v619_v56  ;;  %v699_v32 = vmax.f32 %v697_v6, %v698_v43 }
 0x3e5   :  { %v625_v45 = vmax.f32 %v1534_v50, %v1684_v14  ;;  %v632_v31 = vmax.f32 %v560_v17, %v613_v0  ;;  %v693_v38 = vmax.f32 %v691_v54, %v692_v28  ;;  %v635_v37 = vmax.f32 %v563_v44, %v631_v13 }
 0x3e6   :  { %v1685_v19 = vrot.slane %v1448_v62, 1  ;;  %v1686_v12 = vrot.slane %v1444_v59, 1  ;;  %v701_v26 = vmax.f32 %v633_v35, %v687_v55  ;;  %v1687_v50 = vrot.slane %v1497_v60, 1 }
 0x3e7   :  { %v634_v36 = vmax.f32 %v562_v25, %v625_v45  ;;  %v700_v47 = vmax.f32 %v632_v31, %v681_v21  ;;  %v1688_v5 = vrot.slane %v1492_v51, 1  ;;  %v703_v44 = vmax.f32 %v635_v37, %v699_v32 }
 0x3e8   :  { %v451_v3 = vadd.f32 %v1685_v19, %v1448_v62  ;;  %v463_v27 = vadd.f32 %v1686_v12, %v1444_v59  ;;  %v519_v10 = vadd.f32 %v1687_v50, %v1497_v60  ;;  %v590_v54 = vrot.slane %v1553_v9, 1 }
 0x3e9   :  { %v531_v28 = vadd.f32 %v1688_v5, %v1492_v51  ;;  %v702_v8 = vmax.f32 %v634_v36, %v693_v38  ;;  %v602_v62 = vrot.slane %v1542_v15, 1  ;;  %v658_v4 = vrot.slane %v657_v57, 1 }
 0x3ea   :  { %v533_v34 = vadd.f32 %v519_v10, %v451_v3  ;;  %v670_v59 = vrot.slane %v1568_v7, 1  ;;  %v721_v11 = vsel %vm257_vm4, %v703_v44, %v701_v26  ;;  %v591_v60 = vadd.f32 %v590_v54, %v1553_v9 }
 0x3eb   :  { %v535_v41 = vadd.f32 %v531_v28, %v463_v27  ;;  %v720_v46 = vsel %vm257_vm4, %v702_v8, %v700_v47  ;;  %v603_v2 = vadd.f32 %v602_v62, %v1542_v15  ;;  %v1689_v51 = vrot.slane %v1442_v58, 1  ;;  %987 = vmatprep.mubr.f32.mxu0 %v721_v11 }
 0x3ec   :  { %v1690_v18 = vrot.slane %v1446_v61, 1  ;;  %v659_v17 = vadd.f32 %v658_v4, %v657_v57  ;;  %v671_v48 = vadd.f32 %v670_v59, %v1568_v7  ;;  %988 = vmatmul.mubr.f32.vlgmr.msra.gmra.mxu0 %v720_v46  ;;  %v605_v16 = vadd.f32 %v591_v60, %v533_v34 }
 0x3ed   :  { %v457_v53 = vadd.f32 %v1689_v51, %v1442_v58  ;;  %v607_v20 = vadd.f32 %v603_v2, %v535_v41  ;;  %v1691_v9 = vrot.slane %v1551_v1, 1  ;;  %v1692_v15 = vrot.slane %v1532_v49, 1 }
 0x3ee   :  { %v445_v6 = vadd.f32 %v1690_v18, %v1446_v61  ;;  %v652_v61 = vrot.slane %v1576_v52, 1  ;;  %v664_v57 = vrot.slane %v1562_v29, 1  ;;  %v673_v7 = vadd.f32 %v659_v17, %v605_v16 }
 0x3ef   :  { %v585_v56 = vadd.f32 %v1691_v9, %v1551_v1  ;;  %v597_v43 = vadd.f32 %v1692_v15, %v1532_v49  ;;  %v534_v25 = vadd.f32 %v1502_v22, %v457_v53  ;;  %v675_v0 = vadd.f32 %v671_v48, %v607_v20  ;;  %v1694_v48 = vld [vmem:[#allocation18_spill] sm:$0xff]  ;;  %v1695_v20 = vld [vmem:[#allocation21_spill] sm:$0xff]  ;;  %v1697_v15 = vld [vmem:[#allocation11_spill] sm:$0xff] }
 0x3f0   :  { %v532_v58 = vadd.f32 %v1510_v42, %v445_v6  ;;  %v653_v14 = vadd.f32 %v652_v61, %v1576_v52  ;;  %v665_v1 = vadd.f32 %v664_v57, %v1562_v29  ;;  %v705_v45 = vmul.f32 0.03125, %v673_v7  ;;  %v1693_v6 = vld [vmem:[#allocation17_spill] sm:$0xff]  ;;  %v1702_v57 = vld [vmem:[#allocation16_spill] sm:$0xff] }
 0x3f1   :  { %v606_v55 = vadd.f32 %v597_v43, %v534_v25  ;;  %v707_v21 = vmul.f32 0.03125, %v675_v0  ;;  %v1298_v10 = vmov 1966171168   ;;  %v1698_v43 = vld [vmem:[#allocation12_spill] sm:$0xff]  ;;  %v1701_v25 = vld [vmem:[#allocation15_spill] sm:$0xff] }
 0x3f2   :  { %v604_v13 = vadd.f32 %v585_v56, %v532_v58  ;;  %v1022_v5 = vunpack.c.l.s4 %v1298_v10  ;;  %v1696_v56 = vld [vmem:[#allocation22_spill] sm:$0xff]  ;;  %v1703_v0 = vld [vmem:[#allocation19_spill] sm:$0xff] }
 0x3f3   :  { %v674_v49 = vadd.f32 %v665_v1, %v606_v55  ;;  %v713_v42 = vsel %vm257_vm4, %v707_v21, %v705_v45  ;;  %v1700_v58 = vld [vmem:[#allocation14_spill] sm:$0xff]  ;;  %v1704_v55 = vld [vmem:[#allocation20_spill] sm:$0xff] }
 0x3f4   :  { %v672_v35 = vadd.f32 %v653_v14, %v604_v13  ;;  %916 = vmatprep.mubr.f32.mxu1 %v713_v42  ;;  %v1023_v28 = vunpack.c.0.s8 %v1022_v5 }
 0x3f5   :  { %v706_v32 = vmul.f32 0.03125, %v674_v49 }
 0x3f6   :  { %v704_v22 = vmul.f32 0.03125, %v672_v35  ;;  %v1026_v8 = vsub.s32 %v1023_v28, %v1398_v63 }
 0x3f8   :  { %v712_v31 = vsel %vm257_vm4, %v706_v32, %v704_v22 }
 0x3f9   :  { %917 = vmatmul.mubr.f32.vlgmr.msra.gmra.mxu1 %v712_v31 }
 0x4ac   :  { %v989_v38 = vpop.f32.mrf.mxu0 }
 0x4ae   :  { %v991_v19 = vpop.f32.mrf.mxu0 }
 0x4b9   :  { %v918_v37 = vpop.f32.mrf.mxu1 }
 0x4ba   :  { %v990_v36 = vadd.f32 %v989_v38, %v918_v37 }
 0x4bb   :  { %v920_v3 = vpop.f32.mrf.mxu1 }
 0x4bc   :  { %v1117_v52 = vmul.f32 -1.442695, %v990_v36  ;;  %v992_v12 = vadd.f32 %v991_v19, %v920_v3 }
 0x4be   :  { %1214 = vpow2.f32 %v1117_v52  ;;  %v1118_v29 = vmul.f32 -1.442695, %v992_v12 }
 0x4c0   :  { %1216 = vpow2.f32 %v1118_v29 }
 0x4cb   :  { %v1215_v27 = vpop.eup %1214 }
 0x4cc   :  { %v1000_v26 = vadd.f32 1.0, %v1215_v27 }
 0x4cd   :  { %v1217_v47 = vpop.eup %1216 }
 0x4ce   :  { %v1001_v50 = vadd.f32 1.0, %v1217_v47  ;;  %1218 = vrcp.f32 %v1000_v26 }
 0x4d0   :  { %1220 = vrcp.f32 %v1001_v50 }
 0x4db   :  { %v1219_v44 = vpop.eup %1218 }
 0x4dd   :  { %v1221_v54 = vpop.eup %1220 }
 0x4de   :  { %v1020_v62 = vcombine.low %v1219_v44, %v1221_v54 }
 0x4e0   :  { %v1027_v34 = vrot.slane %v1020_v62, %v1026_v8 }
 0x4e2   :  { %v1028_v41 = vcombine.high %v1027_v34, %v1027_v34  ;;  %v1035_v4 = vrot.slane %v1027_v34, %v1026_v8 }
 0x4e4   :  { %v1042_v59 = vrot.slane %v1028_v41, %v1026_v8  ;;  %v1046_v11 = vrot.slane %v1035_v4, %v1414_v24  ;;  %v1050_v46 = vrot.slane %v1035_v4, %v1411_v23 }
 0x4e6   :  { %v1054_v60 = vrot.slane %v1042_v59, %v1414_v24  ;;  %v1058_v2 = vrot.slane %v1042_v59, %v1411_v23  ;;  %v1063_v51 = vmul.f32 %v1046_v11, %v1425_v39  ;;  %v1064_v53 = vmul.f32 %v1050_v46, %v1428_v40  ;;  %v1699_v40 = vld [vmem:[#allocation13_spill] sm:$0xff] }
 0x4e7   :  { %v1065_v63 = vmul.f32 %v1046_v11, %v1466_v30  ;;  %v1066_v18 = vmul.f32 %v1050_v46, %v1474_v33  ;;  %v1067_v17 = vmul.f32 %v1046_v11, %v1693_v6  ;;  %v1068_v16 = vmul.f32 %v1050_v46, %v1694_v48 }
 0x4e8   :  { %v1069_v9 = vmul.f32 %v1046_v11, %v1695_v20  ;;  %v1070_v24 = vmul.f32 %v1050_v46, %v1696_v56  ;;  %v1071_v23 = vmul.f32 %v1054_v60, %v1697_v15  ;;  %v1072_v39 = vmul.f32 %v1058_v2, %v1698_v43  ;;  %1079 = vst [vmem:[#allocation7] sm:$0xff] %v1063_v51 }
 0x4e9   :  { %1080 = vst [vmem:[#allocation7 + $0x8] sm:$0xff] %v1064_v53  ;;  %v1073_v30 = vmul.f32 %v1054_v60, %v1699_v40  ;;  %v1074_v33 = vmul.f32 %v1058_v2, %v1700_v58  ;;  %v1075_v61 = vmul.f32 %v1054_v60, %v1701_v25  ;;  %v1076_v7 = vmul.f32 %v1058_v2, %v1702_v57 }
 0x4ea   :  { %1081 = vst [vmem:[#allocation7 + $0x10] sm:$0xff] %v1065_v63  ;;  %1082 = vst [vmem:[#allocation7 + $0x18] sm:$0xff] %v1066_v18  ;;  %v1077_v13 = vmul.f32 %v1054_v60, %v1703_v0  ;;  %v1078_v14 = vmul.f32 %v1058_v2, %v1704_v55 }
 0x4eb   :  { %1083 = vst [vmem:[#allocation7 + $0x20] sm:$0xff] %v1067_v17  ;;  %1084 = vst [vmem:[#allocation7 + $0x28] sm:$0xff] %v1068_v16 }
 0x4ec   :  { %1085 = vst [vmem:[#allocation7 + $0x30] sm:$0xff] %v1069_v9  ;;  %1086 = vst [vmem:[#allocation7 + $0x38] sm:$0xff] %v1070_v24 }
 0x4ed   :  { %1087 = vst [vmem:[#allocation7 + $0x40] sm:$0xff] %v1071_v23  ;;  %1088 = vst [vmem:[#allocation7 + $0x48] sm:$0xff] %v1072_v39 }
 0x4ee   :  { %1089 = vst [vmem:[#allocation7 + $0x50] sm:$0xff] %v1073_v30  ;;  %1090 = vst [vmem:[#allocation7 + $0x58] sm:$0xff] %v1074_v33 }
 0x4ef   :  { %1091 = vst [vmem:[#allocation7 + $0x60] sm:$0xff] %v1075_v61  ;;  %1092 = vst [vmem:[#allocation7 + $0x68] sm:$0xff] %v1076_v7 }
 0x4f0   :  { %1093 = vst [vmem:[#allocation7 + $0x70] sm:$0xff] %v1077_v13  ;;  %1094 = vst [vmem:[#allocation7 + $0x78] sm:$0xff] %v1078_v14 }
 0x4f1   :  { %1275 = shalt.err (!%p1272_p0)
}
 0x4f2   :  { %1106 = dma.vmem_to_hbm [thread:$0]  %s1101_s8, 2048, %s1659_s4, [#allocation4], %s1291_s18, %s1291_s18, %s1292_s19  }
 0x4f3   :  { %1288 = dma.done.wait [#allocation4], 2048  }
 0x4f4   :  { %1289 = vsyncadd [#allocation4], 4294965248 }
 0x4f5   :  { %1110 = vsyncpa [#allocation3], 1 }
 0x4f6   :  { %1111 = vsyncpa [#allocation6], 1 }
 0x4f7   :  { %1112 = vsyncpa [#allocation4], 1 }

// kernel: tpu_custom_call.1
= control target key start
LH: loop header
LB: loop body
LE: loop exit
PB: predicated region body
PF: predicated region fallthrough
CT: control target
= control target key end

     0   :  { %9 = vsyncpa [#allocation3], 0  ;;  %s1655_s0 = inlined_call_operand.hbm [shape: f32[2,32,256], index: 0, kind: input, shape index: {}]   ;;  %s1656_s1 = inlined_call_operand.vmem [shape: f32[32,2], index: 1, kind: input, shape index: {}]   ;;  %s1657_s2 = inlined_call_operand.vmem [shape: f32[2,32], index: 2, kind: input, shape index: {}]   ;;  %s1658_s3 = inlined_call_operand.hbm [shape: f32[512,256], index: 3, kind: input, shape index: {}]   ;;  %s1659_s4 = inlined_call_operand.hbm [shape: f32[2,32,256], index: 4, kind: output, shape index: {}]  }
   0x1   :  { %10 = vsyncpa [#allocation6], 0 }
   0x2   :  { %11 = vsyncpa [#allocation4], 0  ;;  %s1290_s15 = smov [#allocation2]  }
   0x3   :  { %s17_s16 = sshll.u32 %s1290_s15, 4  ;;  %s18_s16 = int_to_ptr.vmem [resolvable:$true] %s17_s16 }
   0x4   :  { %s1232_s17 = scalar_lea.vmem %s18_s16, 2048  ;;  %p1237_p1 = scmp.lt.s32.totalorder %s18_s16, %s18_s16 }
   0x5   :  { %p1233_p0 = scmp.ne.s32.totalorder %s18_s16, %s1232_s17  ;;  %p1238_p2 = scmp.lt.s32.totalorder %s1232_s17, %s1232_s17 }
   0x7   :  { %p1239_p3 = por %p1238_p2, %p1237_p1 }
   0x9   :  { %p1240_p4 = pnand %p1239_p3, %p1233_p0 }
   0xb   :  { %1243 = shalt.err (!%p1240_p4)
}
   0xc   :  { %s1291_s18 = smov 256   ;;  %s1292_s19 = smov 16  }
   0xd   :  { %23 = dma.hbm_to_vmem [thread:$0]  %s1655_s0, 2048, %s18_s16, [#allocation3], %s1291_s18, %s1291_s18, %s1292_s19  }
   0xe   :  { %s1293_s22 = smov [#allocation5]  }
   0xf   :  { %s33_s23 = sshll.u32 %s1293_s22, 4  ;;  %s34_s23 = int_to_ptr.vmem [resolvable:$true] %s33_s23 }
  0x10   :  { %s1252_s24 = scalar_lea.vmem %s34_s23, 16384  ;;  %p1257_p6 = scmp.lt.s32.totalorder %s34_s23, %s34_s23 }
  0x11   :  { %p1253_p5 = scmp.ne.s32.totalorder %s34_s23, %s1252_s24  ;;  %p1258_p7 = scmp.lt.s32.totalorder %s1252_s24, %s1252_s24 }
  0x13   :  { %p1259_p8 = por %p1258_p7, %p1257_p6 }
  0x15   :  { %p1260_p9 = pnand %p1259_p8, %p1253_p5 }
  0x17   :  { %1263 = shalt.err (!%p1260_p9)
}
  0x18   :  { %39 = dma.hbm_to_vmem [thread:$0]  %s1658_s3, 16384, %s34_s23, [#allocation6], %s1291_s18, %s1291_s18, %s1292_s19  }
  0x19   :  { %1284 = dma.done.wait [#allocation3], 2048  }
  0x1a   :  { %1285 = vsyncadd [#allocation3], 4294965248 }
  0x1b   :  { %1286 = dma.done.wait [#allocation6], 16384  }
  0x1c   :  { %1287 = vsyncadd [#allocation6], 4294950912  ;;  %v1294_v0 = vmov 1.0   ;;  %v1337_v1 = vld [vmem:[#allocation2 + $0x8] sm:$0xff]  ;;  %v1340_v2 = vld [vmem:[#allocation2] sm:$0xff]  ;;  %v1295_v17 = vmov 0   ;;  %v211_v56 = vlaneseq }
  0x1d   :  { %1119 = vmatprep.subr.mxu0 %v1294_v0  ;;  %126 = vmatprep.mubr.f32.mxu0 %v1337_v1  ;;  %v1342_v3 = vld [vmem:[#allocation2 + $0x18] sm:$0xff]  ;;  %v1346_v4 = vld [vmem:[#allocation2 + $0x10] sm:$0xff]  ;;  %v1348_v5 = vld [vmem:[#allocation2 + $0x28] sm:$0xff]  ;;  %v1296_v45 = vmov 0.0   ;;  %vm1297_vm0 = vmmov 0   ;;  %vm222_vm1 = vcmask 130112  }
  0x1e   :  { %1120 = vmatpush3.msra.mxu0 %v1294_v0  ;;  %v1352_v6 = vld [vmem:[#allocation2 + $0x20] sm:$0xff]  ;;  %v53_v7 = vld [vmem:[#allocation2 + $0x38] sm:$0xff]  ;;  %v52_v8 = vld [vmem:[#allocation2 + $0x30] sm:$0xff]  ;;  %1208 = vset.pattern.permute.xlu0 %v1295_v17  ;;  %v212_v58 = vand.u32 127, %v211_v56  ;;  %v1398_v63 = vshrl.u32 %v211_v56, 7  ;;  %vm229_vm2 = vcmask 195712  }
  0x1f   :  { %1121 = vmatprep.subr.mxu0 %v1294_v0  ;;  %v1355_v9 = vld [vmem:[#allocation2 + $0x48] sm:$0xff]  ;;  %v1358_v10 = vld [vmem:[#allocation2 + $0x40] sm:$0xff]  ;;  %v1360_v11 = vld [vmem:[#allocation2 + $0x58] sm:$0xff]  ;;  %1209 = vset.pattern.permute.xlu1 %v1295_v17  ;;  %vm236_vm3 = vcmask 261312   ;;  %vm257_vm4 = vcmask 1041409   ;;  %vm259_vm5 = vcmask 261120  }
  0x20   :  { %1122 = vmatpush3.msra.mxu0 %v1294_v0  ;;  %v1364_v12 = vld [vmem:[#allocation2 + $0x50] sm:$0xff]  ;;  %v1366_v13 = vld [vmem:[#allocation2 + $0x68] sm:$0xff]  ;;  %v1370_v14 = vld [vmem:[#allocation2 + $0x60] sm:$0xff]  ;;  %1182 = vmatprep.subr.mxu1 %v1296_v45  ;;  %v217_v60 = vadd.s32 4294967288, %v212_v58  ;;  %v224_v61 = vadd.s32 4294967280, %v212_v58  ;;  %vm338_vm6 = vcmask 1041408  }
  0x21   :  { %1123 = vmatprep.subr.mxu0 %v1294_v0  ;;  %v1372_v15 = vld [vmem:[#allocation2 + $0x78] sm:$0xff]  ;;  %v1376_v16 = vld [vmem:[#allocation2 + $0x70] sm:$0xff]  ;;  %v176_v52 = vld [vmem:[%s1656_s1 + $0x8] sm:$0xff]  ;;  %1190 = vmatprep.mubr.msk.f32.mxu1 %vm1297_vm0, %v1296_v45  ;;  %vm334_vm7 = vcmask 15360  }
  0x22   :  { %1124 = vmatpush3.msra.mxu0 %v1294_v0  ;;  %v178_v46 = vld [vmem:[%s1656_s1 + $0x18] sm:$0xff]  ;;  %v177_v49 = vld [vmem:[%s1656_s1 + $0x10] sm:$0xff]  ;;  %v175_v54 = vld [vmem:[%s1656_s1] sm:$0xff]  ;;  %v227_v17 = vsub.s32 %v224_v61, %v1398_v63 }
  0x23   :  { %1125 = vmatprep.subr.mxu0 %v1294_v0  ;;  %1183 = vmatpush3.msra.mxu1 %v178_v46  ;;  %v817_v46 = vld [vmem:[#allocation5 + $0x2e8] sm:$0xff]  ;;  %v812_v56 = vld [vmem:[#allocation5 + $0x2c0] sm:$0xff]  ;;  %v746_v61 = vld [vmem:[#allocation5 + $0xb0] sm:$0xff] }
  0x24   :  { %1126 = vmatpush3.msra.mxu0 %v1294_v0  ;;  %1184 = vmatprep.subr.mxu1 %v1296_v45 }
  0x25   :  { %1127 = vmatprep.subr.mxu0 %v1294_v0  ;;  %1185 = vmatpush3.msra.mxu1 %v177_v49  ;;  %v753_v49 = vld [vmem:[#allocation5 + $0xe8] sm:$0xff] }
  0x26   :  { %1128 = vmatpush3.msra.mxu0 %v1294_v0  ;;  %1186 = vmatprep.subr.mxu1 %v1296_v45 }
  0x27   :  { %1129 = vmatprep.subr.mxu0 %v1294_v0  ;;  %1187 = vmatpush3.msra.mxu1 %v176_v52  ;;  %v751_v52 = vld [vmem:[#allocation5 + $0xd8] sm:$0xff] }
  0x28   :  { %1130 = vmatpush3.msra.mxu0 %v1294_v0  ;;  %1188 = vmatprep.subr.mxu1 %v1296_v45 }
  0x29   :  { %1131 = vmatprep.subr.mxu0 %v1294_v0  ;;  %1189 = vmatpush3.msra.mxu1 %v175_v54  ;;  %v750_v54 = vld [vmem:[#allocation5 + $0xd0] sm:$0xff] }
  0x2a   :  { %1132 = vmatpush3.msra.mxu0 %v1294_v0  ;;  %1193 = vmatprep.subr.mxu1 %v1296_v45 }
  0x2b   :  { %1133 = vmatprep.subr.mxu0 %v1294_v0 }
  0x2c   :  { %1134 = vmatpush3.msra.mxu0 %v1294_v0 }
  0x2d   :  { %1135 = vmatprep.subr.mxu0 %v1294_v0 }
  0x2e   :  { %1136 = vmatpush3.msra.mxu0 %v1294_v0 }
  0x2f   :  { %1137 = vmatprep.subr.mxu0 %v1294_v0 }
  0x30   :  { %1138 = vmatpush3.msra.mxu0 %v1294_v0 }
  0x31   :  { %1139 = vmatprep.subr.mxu0 %v1294_v0 }
  0x32   :  { %1140 = vmatpush3.msra.mxu0 %v1294_v0 }
  0x33   :  { %1141 = vmatprep.subr.mxu0 %v1294_v0 }
  0x34   :  { %1142 = vmatpush3.msra.mxu0 %v1294_v0 }
  0x35   :  { %1143 = vmatprep.subr.mxu0 %v1294_v0 }
  0x36   :  { %1144 = vmatpush3.msra.mxu0 %v1294_v0 }
  0x37   :  { %1145 = vmatprep.subr.mxu0 %v1294_v0 }
  0x38   :  { %1146 = vmatpush3.msra.mxu0 %v1294_v0 }
  0x39   :  { %1147 = vmatprep.subr.mxu0 %v1294_v0 }
  0x3a   :  { %1148 = vmatpush3.msra.mxu0 %v1294_v0 }
  0x3b   :  { %1149 = vmatprep.subr.mxu0 %v1294_v0 }
  0x3c   :  { %1150 = vmatpush3.msra.mxu0 %v1294_v0  ;;  %v231_v0 = vadd.s32 4294967272, %v212_v58 }
  0x3d   :  { %127 = vmatmul.mubr.f32.vlgmr.msra.gmra.mxu0 %v1340_v2 }
  0x3e   :  { %131 = vmatprep.mubr.f32.mxu0 %v1342_v3 }
  0x41   :  { %132 = vmatmul.mubr.f32.gmra.mxu0 %v1346_v4 }
  0x42   :  { %136 = vmatprep.mubr.f32.mxu0 %v1348_v5 }
  0x45   :  { %137 = vmatmul.mubr.f32.gmra.mxu0 %v1352_v6 }
  0x46   :  { %141 = vmatprep.mubr.f32.mxu0 %v53_v7 }
  0x49   :  { %142 = vmatmul.mubr.f32.gmra.mxu0 %v52_v8  ;;  %v220_v8 = vsub.s32 %v217_v60, %v1398_v63  ;;  %v810_v60 = vld [vmem:[#allocation5 + $0x2b0] sm:$0xff] }
  0x4a   :  { %146 = vmatprep.mubr.f32.mxu0 %v1355_v9 }
  0x4d   :  { %147 = vmatmul.mubr.f32.gmra.mxu0 %v1358_v10 }
  0x4e   :  { %151 = vmatprep.mubr.f32.mxu0 %v1360_v11 }
  0x51   :  { %152 = vmatmul.mubr.f32.gmra.mxu0 %v1364_v12 }
  0x52   :  { %156 = vmatprep.mubr.f32.mxu0 %v1366_v13 }
  0x55   :  { %157 = vmatmul.mubr.f32.gmra.mxu0 %v1370_v14 }
  0x56   :  { %161 = vmatprep.mubr.f32.mxu0 %v1372_v15 }
  0x59   :  { %162 = vmatmul.mubr.f32.gmra.mxu0 %v1376_v16 }
  0xfd   :  { %v1151_v18 = vpop.f32.mrf.mxu0 }
  0xff   :  { %v1152_v19 = vpop.f32.mrf.mxu0 }
 0x100   :  { %v1153_v20 = vadd.f32 %v1152_v19, %v1151_v18  ;;  %v215_v18 = vsub.s32 %v212_v58, %v1398_v63  ;;  %v234_v19 = vsub.s32 %v231_v0, %v1398_v63  ;;  %v811_v58 = vld [vmem:[#allocation5 + $0x2b8] sm:$0xff]  ;;  %v745_v0 = vld [vmem:[#allocation5 + $0xa8] sm:$0xff] }
 0x101   :  { %v1154_v21 = vpop.f32.mrf.mxu0 }
 0x102   :  { %v167_v22 = vmul.f32 0.00390625, %v1153_v20 }
 0x103   :  { %v1155_v23 = vpop.f32.mrf.mxu0 }
 0x104   :  { %v1156_v24 = vadd.f32 %v1155_v23, %v1154_v21  ;;  %188 = vperm.xlu0 %1208, %v167_v22  }
 0x105   :  { %v1157_v25 = vpop.f32.mrf.mxu0 }
 0x106   :  { %v168_v26 = vmul.f32 0.00390625, %v1156_v24 }
 0x107   :  { %v1158_v27 = vpop.f32.mrf.mxu0 }
 0x108   :  { %v1159_v28 = vadd.f32 %v1158_v27, %v1157_v25  ;;  %191 = vperm.xlu0 %1208, %v168_v26  }
 0x109   :  { %v1160_v29 = vpop.f32.mrf.mxu0 }
 0x10a   :  { %v169_v30 = vmul.f32 0.00390625, %v1159_v28 }
 0x10b   :  { %v1161_v31 = vpop.f32.mrf.mxu0 }
 0x10c   :  { %v1162_v32 = vadd.f32 %v1161_v31, %v1160_v29  ;;  %194 = vperm.xlu0 %1208, %v169_v30  }
 0x10d   :  { %v1163_v33 = vpop.f32.mrf.mxu0 }
 0x10e   :  { %v170_v34 = vmul.f32 0.00390625, %v1162_v32 }
 0x10f   :  { %v1164_v35 = vpop.f32.mrf.mxu0 }
 0x110   :  { %v1165_v36 = vadd.f32 %v1164_v35, %v1163_v33  ;;  %197 = vperm.xlu0 %1208, %v170_v34  }
 0x111   :  { %v1166_v37 = vpop.f32.mrf.mxu0 }
 0x112   :  { %v171_v38 = vmul.f32 0.00390625, %v1165_v36 }
 0x113   :  { %v1167_v39 = vpop.f32.mrf.mxu0 }
 0x114   :  { %v1168_v40 = vadd.f32 %v1167_v39, %v1166_v37  ;;  %200 = vperm.xlu1 %1209, %v171_v38   ;;  %v333_v37 = vld [vmem:[%s1657_s2] sm:$0x3]  ;;  %s1299_s2 = smov [#allocation7]  }
 0x115   :  { %v1169_v41 = vpop.f32.mrf.mxu0  ;;  %s1100_s8 = sshll.u32 %s1299_s2, 4  ;;  %s1101_s8 = int_to_ptr.vmem [resolvable:$true] %s1100_s8 }
 0x116   :  { %v172_v42 = vmul.f32 0.00390625, %v1168_v40  ;;  %s1264_s9 = scalar_lea.vmem %s1101_s8, 2048  ;;  %p1269_p11 = scmp.lt.s32.totalorder %s1101_s8, %s1101_s8 }
 0x117   :  { %v1170_v43 = vpop.f32.mrf.mxu0  ;;  %p1265_p10 = scmp.ne.s32.totalorder %s1101_s8, %s1264_s9  ;;  %p1270_p12 = scmp.lt.s32.totalorder %s1264_s9, %s1264_s9 }
 0x118   :  { %v1171_v44 = vadd.f32 %v1170_v43, %v1169_v41  ;;  %203 = vperm.xlu1 %1209, %v172_v42   ;;  %v819_v42 = vld [vmem:[#allocation5 + $0x2f8] sm:$0xff]  ;;  %v818_v43 = vld [vmem:[#allocation5 + $0x2f0] sm:$0xff] }
 0x119   :  { %v1172_v47 = vpop.f32.mrf.mxu0  ;;  %923 = vmatprep.subr.mxu0 %v819_v42  ;;  %v731_v42 = vld [vmem:[#allocation5 + $0x38] sm:$0xff]  ;;  %p1271_p13 = por %p1270_p12, %p1269_p11 }
 0x11a   :  { %v173_v48 = vmul.f32 0.00390625, %v1171_v44  ;;  %v755_v44 = vld [vmem:[#allocation5 + $0xf8] sm:$0xff]  ;;  %924 = vmatpush1.msra.mxu0 %v818_v43  ;;  %v794_v43 = vld [vmem:[#allocation5 + $0x230] sm:$0xff] }
 0x11b   :  { %v1173_v50 = vpop.f32.mrf.mxu0  ;;  %925 = vmatprep.subr.mxu0 %v817_v46  ;;  %v793_v46 = vld [vmem:[#allocation5 + $0x228] sm:$0xff]  ;;  %p1272_p0 = pnand %p1271_p13, %p1265_p10 }
 0x11c   :  { %v1174_v51 = vadd.f32 %v1173_v50, %v1172_v47  ;;  %206 = vperm.xlu1 %1209, %v173_v48   ;;  %v754_v47 = vld [vmem:[#allocation5 + $0xf0] sm:$0xff]  ;;  %v816_v48 = vld [vmem:[#allocation5 + $0x2e0] sm:$0xff]  ;;  %v815_v50 = vld [vmem:[#allocation5 + $0x2d8] sm:$0xff] }
 0x11d   :  { %926 = vmatpush1.msra.mxu0 %v816_v48  ;;  %v792_v48 = vld [vmem:[#allocation5 + $0x220] sm:$0xff] }
 0x11e   :  { %v174_v53 = vmul.f32 0.00390625, %v1174_v51  ;;  %v752_v51 = vld [vmem:[#allocation5 + $0xe0] sm:$0xff]  ;;  %927 = vmatprep.subr.mxu0 %v815_v50  ;;  %v791_v50 = vld [vmem:[#allocation5 + $0x218] sm:$0xff] }
 0x120   :  { %209 = vperm.xlu1 %1209, %v174_v53   ;;  %v813_v53 = vld [vmem:[#allocation5 + $0x2c8] sm:$0xff] }
 0x17f   :  { %v189_v55 = vpop.permute.xlu0 %188 }
 0x180   :  { %v216_v26 = vrot.slane %v189_v55, %v215_v18  ;;  %v749_v55 = vld [vmem:[#allocation5 + $0xc8] sm:$0xff] }
 0x183   :  { %v192_v57 = vpop.permute.xlu0 %191 }
 0x184   :  { %v221_v22 = vrot.slane %v192_v57, %v220_v8  ;;  %v748_v57 = vld [vmem:[#allocation5 + $0xc0] sm:$0xff] }
 0x186   :  { %v223_v30 = vsel %vm222_vm1, %v221_v22, %v216_v26  ;;  %v741_v22 = vld [vmem:[#allocation5 + $0x88] sm:$0xff]  ;;  %v739_v26 = vld [vmem:[#allocation5 + $0x78] sm:$0xff] }
 0x187   :  { %v195_v62 = vpop.permute.xlu0 %194 }
 0x188   :  { %v228_v24 = vrot.slane %v195_v62, %v227_v17  ;;  %v809_v62 = vld [vmem:[#allocation5 + $0x2a8] sm:$0xff] }
 0x18a   :  { %v230_v33 = vsel %vm229_vm2, %v228_v24, %v223_v30  ;;  %v740_v24 = vld [vmem:[#allocation5 + $0x80] sm:$0xff]  ;;  %v737_v30 = vld [vmem:[#allocation5 + $0x68] sm:$0xff] }
 0x18b   :  { %v198_v20 = vpop.permute.xlu0 %197 }
 0x18c   :  { %v235_v27 = vrot.slane %v198_v20, %v234_v19  ;;  %v742_v20 = vld [vmem:[#allocation5 + $0x90] sm:$0xff] }
 0x18e   :  { %v237_v35 = vsel %vm236_vm3, %v235_v27, %v230_v33  ;;  %v802_v27 = vld [vmem:[#allocation5 + $0x270] sm:$0xff]  ;;  %v799_v33 = vld [vmem:[#allocation5 + $0x258] sm:$0xff] }
 0x18f   :  { %v201_v59 = vpop.permute.xlu1 %200 }
 0x190   :  { %v241_v28 = vrot.slane %v201_v59, %v215_v18  ;;  %v747_v59 = vld [vmem:[#allocation5 + $0xb8] sm:$0xff] }
 0x191   :  { %v743_v18 = vld [vmem:[#allocation5 + $0x98] sm:$0xff] }
 0x193   :  { %v204_v7 = vpop.permute.xlu1 %203 }
 0x194   :  { %v245_v23 = vrot.slane %v204_v7, %v220_v8  ;;  %v808_v7 = vld [vmem:[#allocation5 + $0x2a0] sm:$0xff] }
 0x195   :  { %v744_v8 = vld [vmem:[#allocation5 + $0xa0] sm:$0xff] }
 0x196   :  { %v246_v31 = vsel %vm222_vm1, %v245_v23, %v241_v28  ;;  %v804_v23 = vld [vmem:[#allocation5 + $0x280] sm:$0xff]  ;;  %v738_v28 = vld [vmem:[#allocation5 + $0x70] sm:$0xff] }
 0x197   :  { %v207_v21 = vpop.permute.xlu1 %206 }
 0x198   :  { %v250_v25 = vrot.slane %v207_v21, %v227_v17  ;;  %v807_v17 = vld [vmem:[#allocation5 + $0x298] sm:$0xff]  ;;  %v805_v21 = vld [vmem:[#allocation5 + $0x288] sm:$0xff] }
 0x19a   :  { %v251_v34 = vsel %vm229_vm2, %v250_v25, %v246_v31  ;;  %v803_v25 = vld [vmem:[#allocation5 + $0x278] sm:$0xff]  ;;  %v800_v31 = vld [vmem:[#allocation5 + $0x260] sm:$0xff] }
 0x19b   :  { %v210_v29 = vpop.permute.xlu1 %209 }
 0x19c   :  { %v255_v32 = vrot.slane %v210_v29, %v234_v19  ;;  %v806_v19 = vld [vmem:[#allocation5 + $0x290] sm:$0xff]  ;;  %v801_v29 = vld [vmem:[#allocation5 + $0x268] sm:$0xff] }
 0x19e   :  { %v256_v36 = vsel %vm236_vm3, %v255_v32, %v251_v34  ;;  %v736_v32 = vld [vmem:[#allocation5 + $0x60] sm:$0xff]  ;;  %v735_v34 = vld [vmem:[#allocation5 + $0x58] sm:$0xff] }
 0x19f   :  { %v258_v38 = vsel %vm257_vm4, %v256_v36, %v237_v35  ;;  %v798_v35 = vld [vmem:[#allocation5 + $0x250] sm:$0xff] }
 0x1a0   :  { %1191 = vmatmul.mubr.msk.f32.vlgmr.msra.gmra.mxu1 %vm259_vm5, %v258_v38  ;;  %v734_v36 = vld [vmem:[#allocation5 + $0x50] sm:$0xff]  ;;  %v733_v38 = vld [vmem:[#allocation5 + $0x48] sm:$0xff] }
 0x1a1   :  { %1194 = vmatpush3.msk.msra.mxu1 %vm338_vm6, %v333_v37  ;;  %1195 = vmatprep.mubr.msk.f32.mxu1 %vm1297_vm0, %v1296_v45  ;;  %v814_v45 = vld [vmem:[#allocation5 + $0x2d0] sm:$0xff]  ;;  %v797_v37 = vld [vmem:[#allocation5 + $0x248] sm:$0xff] }
 0x1a2   :  { %852 = vmatprep.subr.mxu1 %v755_v44  ;;  %928 = vmatpush1.msra.mxu0 %v814_v45  ;;  %v730_v44 = vld [vmem:[#allocation5 + $0x30] sm:$0xff] }
 0x1a3   :  { %929 = vmatprep.subr.mxu0 %v813_v53  ;;  %v790_v45 = vld [vmem:[#allocation5 + $0x210] sm:$0xff]  ;;  %v789_v53 = vld [vmem:[#allocation5 + $0x208] sm:$0xff] }
 0x1a4   :  { %930 = vmatpush1.msra.mxu0 %v812_v56  ;;  %v724_v56 = vld [vmem:[#allocation5] sm:$0xff] }
 0x1a5   :  { %931 = vmatprep.subr.mxu0 %v811_v58  ;;  %v850_v58 = vld [vmem:[#allocation5 + $0x3f0] sm:$0xff] }
 0x1a6   :  { %932 = vmatpush1.msra.mxu0 %v810_v60 }
 0x1a7   :  { %933 = vmatprep.subr.mxu0 %v809_v62 }
 0x1a8   :  { %934 = vmatpush1.msra.mxu0 %v808_v7  ;;  %v787_v7 = vld [vmem:[#allocation5 + $0x1f8] sm:$0xff] }
 0x1a9   :  { %935 = vmatprep.subr.mxu0 %v807_v17  ;;  %v786_v17 = vld [vmem:[#allocation5 + $0x1f0] sm:$0xff] }
 0x1aa   :  { %936 = vmatpush1.msra.mxu0 %v806_v19  ;;  %v785_v19 = vld [vmem:[#allocation5 + $0x1e8] sm:$0xff] }
 0x1ab   :  { %937 = vmatprep.subr.mxu0 %v805_v21  ;;  %v784_v21 = vld [vmem:[#allocation5 + $0x1e0] sm:$0xff] }
 0x1ac   :  { %938 = vmatpush1.msra.mxu0 %v804_v23  ;;  %v1411_v23 = vsub.s32 1, %v1398_v63 }
 0x1ad   :  { %939 = vmatprep.subr.mxu0 %v803_v25 }
 0x1ae   :  { %940 = vmatpush1.msra.mxu0 %v802_v27 }
 0x1af   :  { %941 = vmatprep.subr.mxu0 %v801_v29  ;;  %v845_v29 = vld [vmem:[#allocation5 + $0x3c8] sm:$0xff] }
 0x1b0   :  { %942 = vmatpush1.msra.mxu0 %v800_v31  ;;  %v844_v31 = vld [vmem:[#allocation5 + $0x3c0] sm:$0xff] }
 0x1b1   :  { %943 = vmatprep.subr.mxu0 %v799_v33  ;;  %v843_v33 = vld [vmem:[#allocation5 + $0x3b8] sm:$0xff] }
 0x1b2   :  { %944 = vmatpush1.msra.mxu0 %v798_v35  ;;  %v842_v35 = vld [vmem:[#allocation5 + $0x3b0] sm:$0xff] }
 0x1b3   :  { %945 = vmatprep.subr.mxu0 %v797_v37  ;;  %v841_v37 = vld [vmem:[#allocation5 + $0x3a8] sm:$0xff] }
 0x260   :  { %v328_v39 = vpop.f32.mrf.mxu1 }
 0x261   :  { %v332_v40 = vmax.f32 %v328_v39, 0.0  ;;  %v796_v39 = vld [vmem:[#allocation5 + $0x240] sm:$0xff] }
 0x262   :  { %v1192_v41 = vpop.f32.mrf.mxu1  ;;  %946 = vmatpush1.msra.mxu0 %v796_v39  ;;  %v840_v39 = vld [vmem:[#allocation5 + $0x3a0] sm:$0xff] }
 0x263   :  { %1196 = vmatmul.mubr.msk.f32.vlgmr.msra.gmra.mxu1 %vm334_vm7, %v332_v40  ;;  %v732_v40 = vld [vmem:[#allocation5 + $0x40] sm:$0xff]  ;;  %v795_v41 = vld [vmem:[#allocation5 + $0x238] sm:$0xff] }
 0x264   :  { %853 = vmatpush1.msra.mxu1 %v754_v47  ;;  %v729_v47 = vld [vmem:[#allocation5 + $0x28] sm:$0xff]  ;;  %947 = vmatprep.subr.mxu0 %v795_v41  ;;  %v839_v41 = vld [vmem:[#allocation5 + $0x398] sm:$0xff] }
 0x265   :  { %854 = vmatprep.subr.mxu1 %v753_v49  ;;  %v728_v49 = vld [vmem:[#allocation5 + $0x20] sm:$0xff]  ;;  %948 = vmatpush1.msra.mxu0 %v794_v43  ;;  %v838_v43 = vld [vmem:[#allocation5 + $0x390] sm:$0xff] }
 0x266   :  { %855 = vmatpush1.msra.mxu1 %v752_v51  ;;  %v727_v51 = vld [vmem:[#allocation5 + $0x18] sm:$0xff]  ;;  %949 = vmatprep.subr.mxu0 %v793_v46  ;;  %v837_v46 = vld [vmem:[#allocation5 + $0x388] sm:$0xff] }
 0x267   :  { %856 = vmatprep.subr.mxu1 %v751_v52  ;;  %v726_v52 = vld [vmem:[#allocation5 + $0x10] sm:$0xff]  ;;  %950 = vmatpush1.msra.mxu0 %v792_v48  ;;  %v836_v48 = vld [vmem:[#allocation5 + $0x380] sm:$0xff] }
 0x268   :  { %857 = vmatpush1.msra.mxu1 %v750_v54  ;;  %v725_v54 = vld [vmem:[#allocation5 + $0x8] sm:$0xff]  ;;  %951 = vmatprep.subr.mxu0 %v791_v50  ;;  %v835_v50 = vld [vmem:[#allocation5 + $0x378] sm:$0xff] }
 0x269   :  { %858 = vmatprep.subr.mxu1 %v749_v55  ;;  %v788_v55 = vld [vmem:[#allocation5 + $0x200] sm:$0xff]  ;;  %952 = vmatpush1.msra.mxu0 %v790_v45  ;;  %v834_v45 = vld [vmem:[#allocation5 + $0x370] sm:$0xff] }
 0x26a   :  { %859 = vmatpush1.msra.mxu1 %v748_v57  ;;  %v851_v57 = vld [vmem:[#allocation5 + $0x3f8] sm:$0xff]  ;;  %953 = vmatprep.subr.mxu0 %v789_v53  ;;  %v833_v53 = vld [vmem:[#allocation5 + $0x368] sm:$0xff] }
 0x26b   :  { %860 = vmatprep.subr.mxu1 %v747_v59  ;;  %954 = vmatpush1.msra.mxu0 %v788_v55  ;;  %v832_v55 = vld [vmem:[#allocation5 + $0x360] sm:$0xff] }
 0x26c   :  { %861 = vmatpush1.msra.mxu1 %v746_v61  ;;  %955 = vmatprep.subr.mxu0 %v851_v57  ;;  %v831_v57 = vld [vmem:[#allocation5 + $0x358] sm:$0xff] }
 0x26d   :  { %862 = vmatprep.subr.mxu1 %v745_v0  ;;  %956 = vmatpush2.msra.mxu0 %v850_v58  ;;  %v768_v58 = vld [vmem:[#allocation5 + $0x160] sm:$0xff] }
 0x26e   :  { %863 = vmatpush1.msra.mxu1 %v744_v8  ;;  %v849_v8 = vld [vmem:[#allocation5 + $0x3e8] sm:$0xff] }
 0x26f   :  { %864 = vmatprep.subr.mxu1 %v743_v18  ;;  %957 = vmatprep.subr.mxu0 %v849_v8  ;;  %v848_v18 = vld [vmem:[#allocation5 + $0x3e0] sm:$0xff]  ;;  %v827_v8 = vld [vmem:[#allocation5 + $0x338] sm:$0xff] }
 0x270   :  { %865 = vmatpush1.msra.mxu1 %v742_v20  ;;  %958 = vmatpush2.msra.mxu0 %v848_v18  ;;  %v847_v20 = vld [vmem:[#allocation5 + $0x3d8] sm:$0xff]  ;;  %v826_v18 = vld [vmem:[#allocation5 + $0x330] sm:$0xff] }
 0x271   :  { %866 = vmatprep.subr.mxu1 %v741_v22  ;;  %959 = vmatprep.subr.mxu0 %v847_v20  ;;  %v846_v22 = vld [vmem:[#allocation5 + $0x3d0] sm:$0xff]  ;;  %v825_v20 = vld [vmem:[#allocation5 + $0x328] sm:$0xff] }
 0x272   :  { %867 = vmatpush1.msra.mxu1 %v740_v24  ;;  %960 = vmatpush2.msra.mxu0 %v846_v22  ;;  %v1414_v24 = vsub.s32 0, %v1398_v63  ;;  %v824_v22 = vld [vmem:[#allocation5 + $0x320] sm:$0xff] }
 0x273   :  { %868 = vmatprep.subr.mxu1 %v739_v26  ;;  %961 = vmatprep.subr.mxu0 %v845_v29  ;;  %v759_v29 = vld [vmem:[#allocation5 + $0x118] sm:$0xff] }
 0x274   :  { %869 = vmatpush1.msra.mxu1 %v738_v28  ;;  %v783_v28 = vld [vmem:[#allocation5 + $0x1d8] sm:$0xff]  ;;  %962 = vmatpush2.msra.mxu0 %v844_v31  ;;  %v758_v31 = vld [vmem:[#allocation5 + $0x110] sm:$0xff] }
 0x275   :  { %870 = vmatprep.subr.mxu1 %v737_v30  ;;  %v782_v30 = vld [vmem:[#allocation5 + $0x1d0] sm:$0xff]  ;;  %963 = vmatprep.subr.mxu0 %v843_v33  ;;  %v757_v33 = vld [vmem:[#allocation5 + $0x108] sm:$0xff] }
 0x276   :  { %871 = vmatpush1.msra.mxu1 %v736_v32  ;;  %v781_v32 = vld [vmem:[#allocation5 + $0x1c8] sm:$0xff]  ;;  %964 = vmatpush2.msra.mxu0 %v842_v35 }
 0x277   :  { %872 = vmatprep.subr.mxu1 %v735_v34  ;;  %v780_v34 = vld [vmem:[#allocation5 + $0x1c0] sm:$0xff]  ;;  %965 = vmatprep.subr.mxu0 %v841_v37 }
 0x278   :  { %873 = vmatpush1.msra.mxu1 %v734_v36  ;;  %v779_v36 = vld [vmem:[#allocation5 + $0x1b8] sm:$0xff]  ;;  %966 = vmatpush2.msra.mxu0 %v840_v39 }
 0x279   :  { %874 = vmatprep.subr.mxu1 %v733_v38  ;;  %v778_v38 = vld [vmem:[#allocation5 + $0x1b0] sm:$0xff]  ;;  %967 = vmatprep.subr.mxu0 %v839_v41 }
 0x27a   :  { %875 = vmatpush1.msra.mxu1 %v732_v40  ;;  %v777_v40 = vld [vmem:[#allocation5 + $0x1a8] sm:$0xff]  ;;  %968 = vmatpush2.msra.mxu0 %v838_v43 }
 0x27b   :  { %876 = vmatprep.subr.mxu1 %v731_v42  ;;  %v776_v42 = vld [vmem:[#allocation5 + $0x1a0] sm:$0xff]  ;;  %969 = vmatprep.subr.mxu0 %v837_v46 }
 0x27c   :  { %877 = vmatpush1.msra.mxu1 %v730_v44  ;;  %v775_v44 = vld [vmem:[#allocation5 + $0x198] sm:$0xff]  ;;  %970 = vmatpush2.msra.mxu0 %v836_v48 }
 0x27d   :  { %878 = vmatprep.subr.mxu1 %v729_v47  ;;  %v774_v47 = vld [vmem:[#allocation5 + $0x190] sm:$0xff]  ;;  %971 = vmatprep.subr.mxu0 %v835_v50 }
 0x27e   :  { %879 = vmatpush1.msra.mxu1 %v728_v49  ;;  %v773_v49 = vld [vmem:[#allocation5 + $0x188] sm:$0xff]  ;;  %972 = vmatpush2.msra.mxu0 %v834_v45 }
 0x27f   :  { %880 = vmatprep.subr.mxu1 %v727_v51  ;;  %v772_v51 = vld [vmem:[#allocation5 + $0x180] sm:$0xff]  ;;  %973 = vmatprep.subr.mxu0 %v833_v53 }
 0x280   :  { %881 = vmatpush1.msra.mxu1 %v726_v52  ;;  %v771_v52 = vld [vmem:[#allocation5 + $0x178] sm:$0xff]  ;;  %974 = vmatpush2.msra.mxu0 %v832_v55 }
 0x281   :  { %882 = vmatprep.subr.mxu1 %v725_v54  ;;  %v770_v54 = vld [vmem:[#allocation5 + $0x170] sm:$0xff]  ;;  %975 = vmatprep.subr.mxu0 %v831_v57 }
 0x282   :  { %883 = vmatpush1.msra.mxu1 %v724_v56  ;;  %v769_v56 = vld [vmem:[#allocation5 + $0x168] sm:$0xff] }
 0x283   :  { %884 = vmatprep.subr.mxu1 %v787_v7  ;;  %v765_v7 = vld [vmem:[#allocation5 + $0x148] sm:$0xff] }
 0x284   :  { %885 = vmatpush2.msra.mxu1 %v786_v17  ;;  %v764_v17 = vld [vmem:[#allocation5 + $0x140] sm:$0xff] }
 0x285   :  { %886 = vmatprep.subr.mxu1 %v785_v19  ;;  %v763_v19 = vld [vmem:[#allocation5 + $0x138] sm:$0xff] }
 0x286   :  { %887 = vmatpush2.msra.mxu1 %v784_v21  ;;  %v762_v21 = vld [vmem:[#allocation5 + $0x130] sm:$0xff] }
 0x287   :  { %888 = vmatprep.subr.mxu1 %v783_v28  ;;  %v822_v28 = vld [vmem:[#allocation5 + $0x310] sm:$0xff] }
 0x288   :  { %889 = vmatpush2.msra.mxu1 %v782_v30  ;;  %v821_v30 = vld [vmem:[#allocation5 + $0x308] sm:$0xff] }
 0x289   :  { %890 = vmatprep.subr.mxu1 %v781_v32  ;;  %v820_v32 = vld [vmem:[#allocation5 + $0x300] sm:$0xff] }
 0x28a   :  { %891 = vmatpush2.msra.mxu1 %v780_v34  ;;  %v756_v34 = vld [vmem:[#allocation5 + $0x100] sm:$0xff] }
 0x28b   :  { %892 = vmatprep.subr.mxu1 %v779_v36 }
 0x28c   :  { %893 = vmatpush2.msra.mxu1 %v778_v38 }
 0x28d   :  { %894 = vmatprep.subr.mxu1 %v777_v40 }
 0x28e   :  { %895 = vmatpush2.msra.mxu1 %v776_v42 }
 0x28f   :  { %896 = vmatprep.subr.mxu1 %v775_v44 }
 0x290   :  { %897 = vmatpush2.msra.mxu1 %v774_v47 }
 0x291   :  { %898 = vmatprep.subr.mxu1 %v773_v49 }
 0x292   :  { %899 = vmatpush2.msra.mxu1 %v772_v51 }
 0x293   :  { %900 = vmatprep.subr.mxu1 %v771_v52 }
 0x294   :  { %901 = vmatpush2.msra.mxu1 %v770_v54 }
 0x295   :  { %902 = vmatprep.subr.mxu1 %v769_v56 }
 0x296   :  { %903 = vmatpush2.msra.mxu1 %v768_v58 }
 0x323   :  { %v408_v59 = vpop.f32.mrf.mxu1 }
 0x324   :  { %v1116_v60 = vmul.f32 -1.442695, %v408_v59  ;;  %v830_v59 = vld [vmem:[#allocation5 + $0x350] sm:$0xff] }
 0x325   :  { %v1197_v61 = vpop.f32.mrf.mxu1  ;;  %976 = vmatpush2.msra.mxu0 %v830_v59 }
 0x326   :  { %1210 = vpow2.f32 %v1116_v60  ;;  %v767_v60 = vld [vmem:[#allocation5 + $0x158] sm:$0xff]  ;;  %v829_v61 = vld [vmem:[#allocation5 + $0x348] sm:$0xff] }
 0x327   :  { %904 = vmatprep.subr.mxu1 %v767_v60  ;;  %977 = vmatprep.subr.mxu0 %v829_v61 }
 0x333   :  { %v1211_v62 = vpop.eup %1210 }
 0x334   :  { %v415_v0 = vadd.f32 1.0, %v1211_v62  ;;  %v766_v62 = vld [vmem:[#allocation5 + $0x150] sm:$0xff] }
 0x335   :  { %905 = vmatpush2.msra.mxu1 %v766_v62 }
 0x336   :  { %1212 = vrcp.f32 %v415_v0  ;;  %v828_v0 = vld [vmem:[#allocation5 + $0x340] sm:$0xff]  ;;  %906 = vmatprep.subr.mxu1 %v765_v7 }
 0x337   :  { %978 = vmatpush2.msra.mxu0 %v828_v0  ;;  %907 = vmatpush2.msra.mxu1 %v764_v17 }
 0x338   :  { %979 = vmatprep.subr.mxu0 %v827_v8  ;;  %908 = vmatprep.subr.mxu1 %v763_v19 }
 0x339   :  { %980 = vmatpush2.msra.mxu0 %v826_v18  ;;  %909 = vmatpush2.msra.mxu1 %v762_v21 }
 0x33a   :  { %981 = vmatprep.subr.mxu0 %v825_v20 }
 0x33b   :  { %982 = vmatpush2.msra.mxu0 %v824_v22 }
 0x343   :  { %v1213_v25 = vpop.eup %1212 }
 0x344   :  { %v432_v26 = vrot.slane %v1213_v25, %v1411_v23  ;;  %v425_v27 = vrot.slane %v1213_v25, %v1414_v24  ;;  %v761_v25 = vld [vmem:[#allocation5 + $0x128] sm:$0xff] }
 0x345   :  { %910 = vmatprep.subr.mxu1 %v761_v25 }
 0x346   :  { %434 = vbcast.lane.b32.xlu1 %v432_v26, 256  ;;  %427 = vbcast.lane.b32.xlu0 %v425_v27, 256 }
 0x34a   :  { %502 = vbcast.lane.b32.xlu1 %v432_v26, 264  ;;  %498 = vbcast.lane.b32.xlu0 %v425_v27, 264 }
 0x34e   :  { %574 = vbcast.lane.b32.xlu1 %v432_v26, 272  ;;  %570 = vbcast.lane.b32.xlu0 %v425_v27, 272 }
 0x352   :  { %642 = vbcast.lane.b32.xlu1 %v432_v26, 280  ;;  %638 = vbcast.lane.b32.xlu0 %v425_v27, 280  ;;  %v823_v26 = vld [vmem:[#allocation5 + $0x318] sm:$0xff]  ;;  %v760_v27 = vld [vmem:[#allocation5 + $0x120] sm:$0xff] }
 0x353   :  { %983 = vmatprep.subr.mxu0 %v823_v26  ;;  %911 = vmatpush2.msra.mxu1 %v760_v27 }
 0x354   :  { %984 = vmatpush2.msra.mxu0 %v822_v28  ;;  %912 = vmatprep.subr.mxu1 %v759_v29 }
 0x355   :  { %985 = vmatprep.subr.mxu0 %v821_v30  ;;  %913 = vmatpush2.msra.mxu1 %v758_v31 }
 0x356   :  { %986 = vmatpush2.msra.mxu0 %v820_v32  ;;  %914 = vmatprep.subr.mxu1 %v757_v33 }
 0x357   :  { %915 = vmatpush2.msra.mxu1 %v756_v34 }
 0x3b8   :  { %v435_v35 = vpop.permute.xlu1 %434  ;;  %v428_v36 = vpop.permute.xlu0 %427 }
 0x3b9   :  { %v1419_v37 = vmul.f32 %v435_v35, %v1358_v10  ;;  %v1422_v38 = vmul.f32 %v435_v35, %v1355_v9  ;;  %v1425_v39 = vmul.f32 %v428_v36, %v1340_v2  ;;  %v1428_v40 = vmul.f32 %v428_v36, %v1337_v1 }
 0x3bb   :  { %1672 = vst [vmem:[#allocation11_spill] sm:$0xff] %v1419_v37  ;;  %1673 = vst [vmem:[#allocation12_spill] sm:$0xff] %v1422_v38  ;;  %v452_v41 = vrot.slane %v1419_v37, 4  ;;  %v458_v42 = vrot.slane %v1422_v38, 4  ;;  %v440_v43 = vrot.slane %v1425_v39, 4  ;;  %v446_v44 = vrot.slane %v1428_v40, 4 }
 0x3bc   :  { %v503_v50 = vpop.permute.xlu1 %502  ;;  %v499_v7 = vpop.permute.xlu0 %498 }
 0x3bd   :  { %v453_v10 = vadd.f32 %v452_v41, %v1419_v37  ;;  %v459_v46 = vadd.f32 %v458_v42, %v1422_v38  ;;  %v481_v9 = vmax.f32 %v1419_v37, %v452_v41  ;;  %v487_v2 = vmax.f32 %v1422_v38, %v458_v42 }
 0x3be   :  { %v441_v47 = vadd.f32 %v440_v43, %v1425_v39  ;;  %v447_v1 = vadd.f32 %v446_v44, %v1428_v40  ;;  %v469_v48 = vmax.f32 %v1425_v39, %v440_v43  ;;  %v475_v49 = vmax.f32 %v1428_v40, %v446_v44 }
 0x3bf   :  { %v454_v51 = vrot.slane %v453_v10, 2  ;;  %v460_v45 = vrot.slane %v459_v46, 2  ;;  %v482_v52 = vrot.slane %v481_v9, 2  ;;  %v488_v53 = vrot.slane %v487_v2, 2 }
 0x3c0   :  { %v442_v54 = vrot.slane %v441_v47, 2  ;;  %v448_v55 = vrot.slane %v447_v1, 2  ;;  %v470_v56 = vrot.slane %v469_v48, 2  ;;  %v476_v57 = vrot.slane %v475_v49, 2  ;;  %v575_v26 = vpop.permute.xlu1 %574 }
 0x3c1   :  { %v1442_v58 = vadd.f32 %v454_v51, %v453_v10  ;;  %v1444_v59 = vadd.f32 %v460_v45, %v459_v46  ;;  %v483_v60 = vmax.f32 %v481_v9, %v482_v52  ;;  %v1450_v17 = vmax.f32 %v487_v2, %v488_v53 }
 0x3c2   :  { %v1446_v61 = vadd.f32 %v442_v54, %v441_v47  ;;  %v1448_v62 = vadd.f32 %v448_v55, %v447_v1  ;;  %v471_v0 = vmax.f32 %v469_v48, %v470_v56  ;;  %v1452_v18 = vmax.f32 %v475_v49, %v476_v57 }
 0x3c3   :  { %v484_v8 = vrot.slane %v483_v60, 1  ;;  %v1455_v19 = vmul.f32 %v503_v50, %v1364_v12  ;;  %v1460_v25 = vmul.f32 %v503_v50, %v1360_v11  ;;  %v1466_v30 = vmul.f32 %v499_v7, %v1346_v4 }
 0x3c4   :  { %v472_v22 = vrot.slane %v471_v0, 1  ;;  %v1474_v33 = vmul.f32 %v499_v7, %v1342_v3  ;;  %v1480_v36 = vmul.f32 %v575_v26, %v1370_v14  ;;  %v1486_v43 = vmul.f32 %v575_v26, %v1366_v13 }
 0x3c5   :  { %1674 = vst [vmem:[#allocation13_spill] sm:$0xff] %v1455_v19  ;;  %1675 = vst [vmem:[#allocation14_spill] sm:$0xff] %v1460_v25  ;;  %v520_v29 = vrot.slane %v1455_v19, 4  ;;  %v1468_v12 = vmax.f32 %v483_v60, %v484_v8  ;;  %v526_v32 = vrot.slane %v1460_v25, 4  ;;  %v508_v35 = vrot.slane %v1466_v30, 4  ;;  %v571_v8 = vpop.permute.xlu0 %570 }
 0x3c6   :  { %v1470_v31 = vmax.f32 %v471_v0, %v472_v22  ;;  %1676 = vst [vmem:[#allocation15_spill] sm:$0xff] %v1480_v36  ;;  %v514_v42 = vrot.slane %v1474_v33, 4  ;;  %1677 = vst [vmem:[#allocation16_spill] sm:$0xff] %v1486_v43  ;;  %v592_v7 = vrot.slane %v1480_v36, 4 }
 0x3c7   :  { %v521_v11 = vadd.f32 %v520_v29, %v1455_v19  ;;  %v549_v34 = vmax.f32 %v1455_v19, %v520_v29  ;;  %v527_v4 = vadd.f32 %v526_v32, %v1460_v25  ;;  %v555_v41 = vmax.f32 %v1460_v25, %v526_v32 }
 0x3c8   :  { %v509_v10 = vadd.f32 %v508_v35, %v1466_v30  ;;  %v537_v46 = vmax.f32 %v1466_v30, %v508_v35  ;;  %v515_v14 = vadd.f32 %v514_v42, %v1474_v33  ;;  %v543_v47 = vmax.f32 %v1474_v33, %v514_v42 }
 0x3c9   :  { %v522_v3 = vrot.slane %v521_v11, 2  ;;  %v550_v44 = vrot.slane %v549_v34, 2  ;;  %v528_v9 = vrot.slane %v527_v4, 2  ;;  %v556_v2 = vrot.slane %v555_v41, 2 }
 0x3ca   :  { %v510_v49 = vrot.slane %v509_v10, 2  ;;  %v538_v50 = vrot.slane %v537_v46, 2  ;;  %v516_v45 = vrot.slane %v515_v14, 2  ;;  %v544_v52 = vrot.slane %v543_v47, 2 }
 0x3cb   :  { %v523_v1 = vadd.f32 %v522_v3, %v521_v11  ;;  %v551_v48 = vmax.f32 %v549_v34, %v550_v44  ;;  %v1492_v51 = vadd.f32 %v528_v9, %v527_v4  ;;  %v1494_v13 = vmax.f32 %v555_v41, %v556_v2  ;;  %v643_v41 = vpop.permute.xlu1 %642 }
 0x3cc   :  { %v511_v55 = vadd.f32 %v510_v49, %v509_v10  ;;  %v539_v56 = vmax.f32 %v537_v46, %v538_v50  ;;  %v1497_v60 = vadd.f32 %v516_v45, %v515_v14  ;;  %v1499_v0 = vmax.f32 %v543_v47, %v544_v52 }
 0x3cd   :  { %v524_v53 = vrot.slane %v523_v1, 1  ;;  %v552_v54 = vrot.slane %v551_v48, 1  ;;  %v593_v34 = vadd.f32 %v592_v7, %v1480_v36  ;;  %v598_v35 = vrot.slane %v1486_v43, 4 }
 0x3ce   :  { %v512_v29 = vrot.slane %v511_v55, 1  ;;  %v540_v32 = vrot.slane %v539_v56, 1  ;;  %v621_v4 = vmax.f32 %v1480_v36, %v592_v7  ;;  %v1515_v44 = vmul.f32 %v571_v8, %v1352_v6 }
 0x3cf   :  { %v1502_v22 = vadd.f32 %v524_v53, %v523_v1  ;;  %v1504_v26 = vmax.f32 %v551_v48, %v552_v54  ;;  %v1518_v10 = vmul.f32 %v571_v8, %v1348_v5  ;;  %v594_v46 = vrot.slane %v593_v34, 2 }
 0x3d0   :  { %v1510_v42 = vadd.f32 %v512_v29, %v511_v55  ;;  %v1512_v3 = vmax.f32 %v539_v56, %v540_v32  ;;  %1678 = vst [vmem:[#allocation17_spill] sm:$0xff] %v1515_v44  ;;  %v599_v9 = vadd.f32 %v598_v35, %v1486_v43  ;;  %v622_v2 = vrot.slane %v621_v4, 2  ;;  %v1223_v56 = vld [vmem:[#allocation2 + $0x38] sm:$0xff] }
 0x3d1   :  { %1679 = vst [vmem:[#allocation18_spill] sm:$0xff] %v1518_v10  ;;  %v1522_v14 = vmax.f32 %v1486_v43, %v598_v35  ;;  %v580_v47 = vrot.slane %v1515_v44, 4  ;;  %v586_v1 = vrot.slane %v1518_v10, 4  ;;  %v1527_v48 = vmul.f32 %v643_v41, %v1376_v16  ;;  %v639_v16 = vpop.permute.xlu0 %638 }
 0x3d2   :  { %v1530_v6 = vmul.f32 %v643_v41, %v1372_v15  ;;  %v1532_v49 = vadd.f32 %v594_v46, %v593_v34  ;;  %v600_v5 = vrot.slane %v599_v9, 2  ;;  %v1534_v50 = vmax.f32 %v621_v4, %v622_v2  ;;  %v1222_v2 = vld [vmem:[#allocation2 + $0x30] sm:$0xff] }
 0x3d3   :  { %1680 = vst [vmem:[#allocation19_spill] sm:$0xff] %v1527_v48  ;;  %v628_v45 = vrot.slane %v1522_v14, 2  ;;  %v581_v52 = vadd.f32 %v580_v47, %v1515_v44  ;;  %v587_v53 = vadd.f32 %v586_v1, %v1518_v10  ;;  %v609_v54 = vmax.f32 %v1515_v44, %v580_v47 }
 0x3d4   :  { %1681 = vst [vmem:[#allocation20_spill] sm:$0xff] %v1530_v6  ;;  %v615_v55 = vmax.f32 %v1518_v10, %v586_v1  ;;  %v1542_v15 = vadd.f32 %v600_v5, %v599_v9  ;;  %v660_v8 = vrot.slane %v1527_v48, 4  ;;  %v666_v41 = vrot.slane %v1530_v6, 4 }
 0x3d5   :  { %v582_v29 = vrot.slane %v581_v52, 2  ;;  %v588_v32 = vrot.slane %v587_v53, 2  ;;  %v610_v34 = vrot.slane %v609_v54, 2  ;;  %v1549_v47 = vmul.f32 %v1222_v2, %v639_v16 }
 0x3d6   :  { %v616_v35 = vrot.slane %v615_v55, 2  ;;  %v661_v4 = vadd.f32 %v660_v8, %v1527_v48  ;;  %v689_v46 = vmax.f32 %v1527_v48, %v660_v8  ;;  %v1555_v27 = vmul.f32 %v1223_v56, %v639_v16 }
 0x3d7   :  { %1682 = vst [vmem:[#allocation21_spill] sm:$0xff] %v1549_v47  ;;  %v1551_v1 = vadd.f32 %v582_v29, %v581_v52  ;;  %v1553_v9 = vadd.f32 %v588_v32, %v587_v53  ;;  %v611_v5 = vmax.f32 %v609_v54, %v610_v34  ;;  %v667_v57 = vadd.f32 %v666_v41, %v1530_v6 }
 0x3d8   :  { %1683 = vst [vmem:[#allocation22_spill] sm:$0xff] %v1555_v27  ;;  %v662_v20 = vrot.slane %v661_v4, 2  ;;  %v690_v11 = vrot.slane %v689_v46, 2  ;;  %v695_v21 = vmax.f32 %v1530_v6, %v666_v41  ;;  %v648_v2 = vrot.slane %v1549_v47, 4 }
 0x3d9   :  { %v612_v8 = vrot.slane %v611_v5, 1  ;;  %v654_v52 = vrot.slane %v1555_v27, 4  ;;  %v668_v53 = vrot.slane %v667_v57, 2  ;;  %v478_v6 = vrot.slane %v1452_v18, 1 }
 0x3da   :  { %v1562_v29 = vadd.f32 %v662_v20, %v661_v4  ;;  %v691_v54 = vmax.f32 %v689_v46, %v690_v11  ;;  %v696_v32 = vrot.slane %v695_v21, 2  ;;  %v649_v16 = vadd.f32 %v648_v2, %v1549_v47 }
 0x3db   :  { %v655_v56 = vadd.f32 %v654_v52, %v1555_v27  ;;  %v677_v34 = vmax.f32 %v1549_v47, %v648_v2  ;;  %v683_v41 = vmax.f32 %v1555_v27, %v654_v52  ;;  %v1568_v7 = vadd.f32 %v668_v53, %v667_v57 }
 0x3dc   :  { %v692_v28 = vrot.slane %v691_v54, 1  ;;  %v490_v48 = vrot.slane %v1450_v17, 1  ;;  %v650_v20 = vrot.slane %v649_v16, 2  ;;  %v479_v46 = vmax.f32 %v1452_v18, %v478_v6 }
 0x3dd   :  { %v656_v4 = vrot.slane %v655_v56, 2  ;;  %v678_v43 = vrot.slane %v677_v34, 2  ;;  %v684_v11 = vrot.slane %v683_v41, 2  ;;  %v546_v25 = vrot.slane %v1499_v0, 1 }
 0x3de   :  { %v491_v36 = vmax.f32 %v1450_v17, %v490_v48  ;;  %v558_v2 = vrot.slane %v1494_v13, 1  ;;  %v1576_v52 = vadd.f32 %v650_v20, %v649_v16  ;;  %v617_v19 = vmax.f32 %v615_v55, %v616_v35 }
 0x3df   :  { %v657_v57 = vadd.f32 %v656_v4, %v655_v56  ;;  %v679_v53 = vmax.f32 %v677_v34, %v678_v43  ;;  %v547_v38 = vmax.f32 %v1499_v0, %v546_v25  ;;  %v629_v27 = vmax.f32 %v1522_v14, %v628_v45 }
 0x3e0   :  { %v559_v37 = vmax.f32 %v1494_v13, %v558_v2  ;;  %v685_v47 = vmax.f32 %v683_v41, %v684_v11  ;;  %v618_v18 = vrot.slane %v617_v19, 1  ;;  %v697_v6 = vmax.f32 %v695_v21, %v696_v32 }
 0x3e1   :  { %v680_v10 = vrot.slane %v679_v53, 1  ;;  %v560_v17 = vmax.f32 %v1470_v31, %v1512_v3  ;;  %v561_v48 = vmax.f32 %v479_v46, %v547_v38  ;;  %v630_v16 = vrot.slane %v629_v27, 1 }
 0x3e2   :  { %v563_v44 = vmax.f32 %v491_v36, %v559_v37  ;;  %v686_v20 = vrot.slane %v685_v47, 1  ;;  %v619_v56 = vmax.f32 %v617_v19, %v618_v18  ;;  %v698_v43 = vrot.slane %v697_v6, 1 }
 0x3e3   :  { %v562_v25 = vmax.f32 %v1468_v12, %v1504_v26  ;;  %v613_v0 = vmax.f32 %v611_v5, %v612_v8  ;;  %v631_v13 = vmax.f32 %v629_v27, %v630_v16  ;;  %v1684_v14 = vrot.slane %v1534_v50, 1 }
 0x3e4   :  { %v687_v55 = vmax.f32 %v685_v47, %v686_v20  ;;  %v681_v21 = vmax.f32 %v679_v53, %v680_v10  ;;  %v633_v35 = vmax.f32 %v561_v48, %v619_v56  ;;  %v699_v32 = vmax.f32 %v697_v6, %v698_v43 }
 0x3e5   :  { %v625_v45 = vmax.f32 %v1534_v50, %v1684_v14  ;;  %v632_v31 = vmax.f32 %v560_v17, %v613_v0  ;;  %v693_v38 = vmax.f32 %v691_v54, %v692_v28  ;;  %v635_v37 = vmax.f32 %v563_v44, %v631_v13 }
 0x3e6   :  { %v1685_v19 = vrot.slane %v1448_v62, 1  ;;  %v1686_v12 = vrot.slane %v1444_v59, 1  ;;  %v701_v26 = vmax.f32 %v633_v35, %v687_v55  ;;  %v1687_v50 = vrot.slane %v1497_v60, 1 }
 0x3e7   :  { %v634_v36 = vmax.f32 %v562_v25, %v625_v45  ;;  %v700_v47 = vmax.f32 %v632_v31, %v681_v21  ;;  %v1688_v5 = vrot.slane %v1492_v51, 1  ;;  %v703_v44 = vmax.f32 %v635_v37, %v699_v32 }
 0x3e8   :  { %v451_v3 = vadd.f32 %v1685_v19, %v1448_v62  ;;  %v463_v27 = vadd.f32 %v1686_v12, %v1444_v59  ;;  %v519_v10 = vadd.f32 %v1687_v50, %v1497_v60  ;;  %v590_v54 = vrot.slane %v1553_v9, 1 }
 0x3e9   :  { %v531_v28 = vadd.f32 %v1688_v5, %v1492_v51  ;;  %v702_v8 = vmax.f32 %v634_v36, %v693_v38  ;;  %v602_v62 = vrot.slane %v1542_v15, 1  ;;  %v658_v4 = vrot.slane %v657_v57, 1 }
 0x3ea   :  { %v533_v34 = vadd.f32 %v519_v10, %v451_v3  ;;  %v670_v59 = vrot.slane %v1568_v7, 1  ;;  %v721_v11 = vsel %vm257_vm4, %v703_v44, %v701_v26  ;;  %v591_v60 = vadd.f32 %v590_v54, %v1553_v9 }
 0x3eb   :  { %v535_v41 = vadd.f32 %v531_v28, %v463_v27  ;;  %v720_v46 = vsel %vm257_vm4, %v702_v8, %v700_v47  ;;  %v603_v2 = vadd.f32 %v602_v62, %v1542_v15  ;;  %v1689_v51 = vrot.slane %v1442_v58, 1  ;;  %987 = vmatprep.mubr.f32.mxu0 %v721_v11 }
 0x3ec   :  { %v1690_v18 = vrot.slane %v1446_v61, 1  ;;  %v659_v17 = vadd.f32 %v658_v4, %v657_v57  ;;  %v671_v48 = vadd.f32 %v670_v59, %v1568_v7  ;;  %988 = vmatmul.mubr.f32.vlgmr.msra.gmra.mxu0 %v720_v46  ;;  %v605_v16 = vadd.f32 %v591_v60, %v533_v34 }
 0x3ed   :  { %v457_v53 = vadd.f32 %v1689_v51, %v1442_v58  ;;  %v607_v20 = vadd.f32 %v603_v2, %v535_v41  ;;  %v1691_v9 = vrot.slane %v1551_v1, 1  ;;  %v1692_v15 = vrot.slane %v1532_v49, 1 }
 0x3ee   :  { %v445_v6 = vadd.f32 %v1690_v18, %v1446_v61  ;;  %v652_v61 = vrot.slane %v1576_v52, 1  ;;  %v664_v57 = vrot.slane %v1562_v29, 1  ;;  %v673_v7 = vadd.f32 %v659_v17, %v605_v16 }
 0x3ef   :  { %v585_v56 = vadd.f32 %v1691_v9, %v1551_v1  ;;  %v597_v43 = vadd.f32 %v1692_v15, %v1532_v49  ;;  %v534_v25 = vadd.f32 %v1502_v22, %v457_v53  ;;  %v675_v0 = vadd.f32 %v671_v48, %v607_v20  ;;  %v1694_v48 = vld [vmem:[#allocation18_spill] sm:$0xff]  ;;  %v1695_v20 = vld [vmem:[#allocation21_spill] sm:$0xff]  ;;  %v1697_v15 = vld [vmem:[#allocation11_spill] sm:$0xff] }
 0x3f0   :  { %v532_v58 = vadd.f32 %v1510_v42, %v445_v6  ;;  %v653_v14 = vadd.f32 %v652_v61, %v1576_v52  ;;  %v665_v1 = vadd.f32 %v664_v57, %v1562_v29  ;;  %v705_v45 = vmul.f32 0.03125, %v673_v7  ;;  %v1693_v6 = vld [vmem:[#allocation17_spill] sm:$0xff]  ;;  %v1702_v57 = vld [vmem:[#allocation16_spill] sm:$0xff] }
 0x3f1   :  { %v606_v55 = vadd.f32 %v597_v43, %v534_v25  ;;  %v707_v21 = vmul.f32 0.03125, %v675_v0  ;;  %v1298_v10 = vmov 1966171168   ;;  %v1698_v43 = vld [vmem:[#allocation12_spill] sm:$0xff]  ;;  %v1701_v25 = vld [vmem:[#allocation15_spill] sm:$0xff] }
 0x3f2   :  { %v604_v13 = vadd.f32 %v585_v56, %v532_v58  ;;  %v1022_v5 = vunpack.c.l.s4 %v1298_v10  ;;  %v1696_v56 = vld [vmem:[#allocation22_spill] sm:$0xff]  ;;  %v1703_v0 = vld [vmem:[#allocation19_spill] sm:$0xff] }
 0x3f3   :  { %v674_v49 = vadd.f32 %v665_v1, %v606_v55  ;;  %v713_v42 = vsel %vm257_vm4, %v707_v21, %v705_v45  ;;  %v1700_v58 = vld [vmem:[#allocation14_spill] sm:$0xff]  ;;  %v1704_v55 = vld [vmem:[#allocation20_spill] sm:$0xff] }
 0x3f4   :  { %v672_v35 = vadd.f32 %v653_v14, %v604_v13  ;;  %916 = vmatprep.mubr.f32.mxu1 %v713_v42  ;;  %v1023_v28 = vunpack.c.0.s8 %v1022_v5 }
 0x3f5   :  { %v706_v32 = vmul.f32 0.03125, %v674_v49 }
 0x3f6   :  { %v704_v22 = vmul.f32 0.03125, %v672_v35  ;;  %v1026_v8 = vsub.s32 %v1023_v28, %v1398_v63 }
 0x3f8   :  { %v712_v31 = vsel %vm257_vm4, %v706_v32, %v704_v22 }
 0x3f9   :  { %917 = vmatmul.mubr.f32.vlgmr.msra.gmra.mxu1 %v712_v31 }
 0x4ac   :  { %v989_v38 = vpop.f32.mrf.mxu0 }
 0x4ae   :  { %v991_v19 = vpop.f32.mrf.mxu0 }
 0x4b9   :  { %v918_v37 = vpop.f32.mrf.mxu1 }
 0x4ba   :  { %v990_v36 = vadd.f32 %v989_v38, %v918_v37 }
 0x4bb   :  { %v920_v3 = vpop.f32.mrf.mxu1 }
 0x4bc   :  { %v1117_v52 = vmul.f32 -1.442695, %v990_v36  ;;  %v992_v12 = vadd.f32 %v991_v19, %v920_v3 }
 0x4be   :  { %1214 = vpow2.f32 %v1117_v52  ;;  %v1118_v29 = vmul.f32 -1.442695, %v992_v12 }
 0x4c0   :  { %1216 = vpow2.f32 %v1118_v29 }
 0x4cb   :  { %v1215_v27 = vpop.eup %1214 }
 0x4cc   :  { %v1000_v26 = vadd.f32 1.0, %v1215_v27 }
 0x4cd   :  { %v1217_v47 = vpop.eup %1216 }
 0x4ce   :  { %v1001_v50 = vadd.f32 1.0, %v1217_v47  ;;  %1218 = vrcp.f32 %v1000_v26 }
 0x4d0   :  { %1220 = vrcp.f32 %v1001_v50 }
 0x4db   :  { %v1219_v44 = vpop.eup %1218 }
 0x4dd   :  { %v1221_v54 = vpop.eup %1220 }
 0x4de   :  { %v1020_v62 = vcombine.low %v1219_v44, %v1221_v54 }
 0x4e0   :  { %v1027_v34 = vrot.slane %v1020_v62, %v1026_v8 }
 0x4e2   :  { %v1028_v41 = vcombine.high %v1027_v34, %v1027_v34  ;;  %v1035_v4 = vrot.slane %v1027_v34, %v1026_v8 }
 0x4e4   :  { %v1042_v59 = vrot.slane %v1028_v41, %v1026_v8  ;;  %v1046_v11 = vrot.slane %v1035_v4, %v1414_v24  ;;  %v1050_v46 = vrot.slane %v1035_v4, %v1411_v23 }
 0x4e6   :  { %v1054_v60 = vrot.slane %v1042_v59, %v1414_v24  ;;  %v1058_v2 = vrot.slane %v1042_v59, %v1411_v23  ;;  %v1063_v51 = vmul.f32 %v1046_v11, %v1425_v39  ;;  %v1064_v53 = vmul.f32 %v1050_v46, %v1428_v40  ;;  %v1699_v40 = vld [vmem:[#allocation13_spill] sm:$0xff] }
 0x4e7   :  { %v1065_v63 = vmul.f32 %v1046_v11, %v1466_v30  ;;  %v1066_v18 = vmul.f32 %v1050_v46, %v1474_v33  ;;  %v1067_v17 = vmul.f32 %v1046_v11, %v1693_v6  ;;  %v1068_v16 = vmul.f32 %v1050_v46, %v1694_v48 }
 0x4e8   :  { %v1069_v9 = vmul.f32 %v1046_v11, %v1695_v20  ;;  %v1070_v24 = vmul.f32 %v1050_v46, %v1696_v56  ;;  %v1071_v23 = vmul.f32 %v1054_v60, %v1697_v15  ;;  %v1072_v39 = vmul.f32 %v1058_v2, %v1698_v43  ;;  %1079 = vst [vmem:[#allocation7] sm:$0xff] %v1063_v51 }
 0x4e9   :  { %1080 = vst [vmem:[#allocation7 + $0x8] sm:$0xff] %v1064_v53  ;;  %v1073_v30 = vmul.f32 %v1054_v60, %v1699_v40  ;;  %v1074_v33 = vmul.f32 %v1058_v2, %v1700_v58  ;;  %v1075_v61 = vmul.f32 %v1054_v60, %v1701_v25  ;;  %v1076_v7 = vmul.f32 %v1058_v2, %v1702_v57 }
 0x4ea   :  { %1081 = vst [vmem:[#allocation7 + $0x10] sm:$0xff] %v1065_v63  ;;  %1082 = vst [vmem:[#allocation7 + $0x18] sm:$0xff] %v1066_v18  ;;  %v1077_v13 = vmul.f32 %v1054_v60, %v1703_v0  ;;  %v1078_v14 = vmul.f32 %v1058_v2, %v1704_v55 }
 0x4eb   :  { %1083 = vst [vmem:[#allocation7 + $0x20] sm:$0xff] %v1067_v17  ;;  %1084 = vst [vmem:[#allocation7 + $0x28] sm:$0xff] %v1068_v16 }
 0x4ec   :  { %1085 = vst [vmem:[#allocation7 + $0x30] sm:$0xff] %v1069_v9  ;;  %1086 = vst [vmem:[#allocation7 + $0x38] sm:$0xff] %v1070_v24 }
 0x4ed   :  { %1087 = vst [vmem:[#allocation7 + $0x40] sm:$0xff] %v1071_v23  ;;  %1088 = vst [vmem:[#allocation7 + $0x48] sm:$0xff] %v1072_v39 }
 0x4ee   :  { %1089 = vst [vmem:[#allocation7 + $0x50] sm:$0xff] %v1073_v30  ;;  %1090 = vst [vmem:[#allocation7 + $0x58] sm:$0xff] %v1074_v33 }
 0x4ef   :  { %1091 = vst [vmem:[#allocation7 + $0x60] sm:$0xff] %v1075_v61  ;;  %1092 = vst [vmem:[#allocation7 + $0x68] sm:$0xff] %v1076_v7 }
 0x4f0   :  { %1093 = vst [vmem:[#allocation7 + $0x70] sm:$0xff] %v1077_v13  ;;  %1094 = vst [vmem:[#allocation7 + $0x78] sm:$0xff] %v1078_v14 }
 0x4f1   :  { %1275 = shalt.err (!%p1272_p0)
}
 0x4f2   :  { %1106 = dma.vmem_to_hbm [thread:$0]  %s1101_s8, 2048, %s1659_s4, [#allocation4], %s1291_s18, %s1291_s18, %s1292_s19  }
 0x4f3   :  { %1288 = dma.done.wait [#allocation4], 2048  }
 0x4f4   :  { %1289 = vsyncadd [#allocation4], 4294965248 }
 0x4f5   :  { %1110 = vsyncpa [#allocation3], 1 }
 0x4f6   :  { %1111 = vsyncpa [#allocation6], 1 }
 0x4f7   :  { %1112 = vsyncpa [#allocation4], 1 }

</bundles_post_ra>
